<compile_context>
chip_gen: v6e
topology: v6e:2x2x1
jax: 0.10.0
libtpu: 0.0.40
codegen_flags: <defaults>
</compile_context>

<pallas_src>
import functools

import jax
import jax.numpy as jnp
import numpy as np
from jax.experimental import pallas as pl
from jax.experimental.pallas import tpu as pltpu


# ----------------------------------------------------------------------------
# One Conv1d(k, stride=1, no padding) + MaxPool1d(pool) stage, channels-last.
# ----------------------------------------------------------------------------
def _conv_pool_layer(y, w_ref, b_ref, conv_ref, pool):
    """y: (L, C_in) f32 value; w_ref: (K*C_in, C_out); b_ref: (1, C_out);
    conv_ref: (L_out, C_out) f32 VMEM scratch. Returns (L_out // pool, C_out)."""
    L, c_in = y.shape
    L_out, c_out = conv_ref.shape
    K = w_ref.shape[0] // c_in
    L_pool = L_out // pool

    # im2col: concat the K shifted views along the channel (lane) axis, then a single
    # MXU matmul against the pre-flattened (K*C_in, C_out) weights.
    cols = jnp.concatenate([y[k:k + L_out, :] for k in range(K)], axis=1)
    conv_ref[...] = (
        jnp.dot(cols, w_ref[...], preferred_element_type=jnp.float32)
        + b_ref[...].astype(jnp.float32)
    )

    # MaxPool1d(pool): `pool` strided reads + elementwise max -> one vectorized result.
    pooled = conv_ref[pl.ds(0, L_pool, stride=pool), :]
    for p in range(1, pool):
        pooled = jnp.maximum(pooled, conv_ref[pl.ds(p, L_pool, stride=pool), :])
    return pooled


# ----------------------------------------------------------------------------
# Fused kernel: the full CNN stack for one batch element per grid step.
# ----------------------------------------------------------------------------
def _fused_cnn_kernel(*refs, n_layers, pools):
    x_ref = refs[0]                                  # (L0, C0)
    w_refs = refs[1:1 + 2 * n_layers:2]              # (K*C_in, C_out) each
    b_refs = refs[2:2 + 2 * n_layers:2]              # (1, C_out) each
    o_ref = refs[1 + 2 * n_layers]                   # (L_final, C_final)
    conv_refs = refs[2 + 2 * n_layers:]              # per-layer conv scratch

    y = x_ref[...].astype(jnp.float32)
    for w_ref, b_ref, conv_ref, pool in zip(w_refs, b_refs, conv_refs, pools):
        y = _conv_pool_layer(y, w_ref, b_ref, conv_ref, pool)
    o_ref[...] = y.astype(o_ref.dtype)


# ----------------------------------------------------------------------------
# Forward wrapper (PyTorch NCL boundary)
# ----------------------------------------------------------------------------
def fake_bert_cnn_forward(x_ncl, params, pool_sizes):
    """x_ncl: (B, C_in, L) like torch Conv1d input.
    params[i] = (w (K, C_in, C_out), b (C_out,))."""
    B, C0, L0 = x_ncl.shape
    n_layers = len(params)

    # Host-side prep: channels-last activations + flattened weights (tiny, one-time).
    x_nlc = jnp.transpose(x_ncl, (0, 2, 1))

    flat_args, w_specs, conv_dims = [], [], []
    L, C = L0, C0
    for (w, b), pool in zip(params, pool_sizes):
        K, C_in, C_out = w.shape
        assert C_in == C, (C_in, C)
        L_out = L - K + 1
        conv_dims.append((L_out, C_out))
        flat_args += [w.reshape(K * C_in, C_out), b.reshape(1, C_out)]
        w_specs += [
            pl.BlockSpec((K * C_in, C_out), lambda bi: (0, 0)),
            pl.BlockSpec((1, C_out), lambda bi: (0, 0)),
        ]
        L, C = L_out // pool, C_out
    L_final, C_final = L, C

    kernel = functools.partial(
        _fused_cnn_kernel, n_layers=n_layers, pools=tuple(pool_sizes)
    )

    out_nlc = pl.pallas_call(
        kernel,
        out_shape=jax.ShapeDtypeStruct((B, L_final, C_final), x_ncl.dtype),
        grid_spec=pltpu.PrefetchScalarGridSpec(
            num_scalar_prefetch=0,
            grid=(B,),
            in_specs=[pl.BlockSpec((None, L0, C0), lambda bi: (bi, 0, 0))] + w_specs,
            out_specs=pl.BlockSpec((None, L_final, C_final), lambda bi: (bi, 0, 0)),
            scratch_shapes=[pltpu.VMEM(d, jnp.float32) for d in conv_dims],
        ),
        compiler_params=pltpu.CompilerParams(dimension_semantics=("parallel",)),
    )(x_nlc, *flat_args)

    return jnp.transpose(out_nlc, (0, 2, 1))  # back to (B, C_out, L_final)


def init_params(key, layer_cfgs):
    """Deterministic init mimicking PyTorch Conv1d default (uniform +/- 1/sqrt(fan_in))."""
    params = []
    for (c_in, c_out, k) in layer_cfgs:
        key, wk, bk = jax.random.split(key, 3)
        bound = 1.0 / float(np.sqrt(c_in * k))
        # stored as (K, C_in, C_out) == transpose of torch's (C_out, C_in, K)
        w = jax.random.uniform(wk, (k, c_in, c_out), jnp.float32, -bound, bound)
        b = jax.random.uniform(bk, (c_out,), jnp.float32, -bound, bound)
        params.append((w, b))
    return params


# ----------------------------------------------------------------------------
# Pure-JAX reference (same semantics as the PyTorch module) for verification
# ----------------------------------------------------------------------------
def ref_forward(x_ncl, params, pool_sizes):
    y = x_ncl
    for (w, b), pool in zip(params, pool_sizes):
        K, C_in, C_out = w.shape
        B, _, L = y.shape
        L_out = L - K + 1
        cols = jnp.stack([y[:, :, k:k + L_out] for k in range(K)], axis=1)  # (B,K,Cin,Lout)
        conv = jnp.einsum("kio,bkil->bol", w, cols) + b[None, :, None]
        L_pool = L_out // pool
        conv = conv[:, :, : L_pool * pool].reshape(B, C_out, L_pool, pool)
        y = jnp.max(conv, axis=-1)
    return y


if __name__ == "__main__":
    # Small config consistent with the module's parametrization:
    #   conv_count=3, kernel=5, stride=1, pool=5
    #   channels: 8 -> 32 -> 32 -> 32, lengths: 256 -> 252 -> 50 -> 46 -> 9 -> 5 -> 1
    B, L0, C0, C_HID, K, POOL = 2, 256, 8, 32, 5, 5
    layer_cfgs = [(C0, C_HID, K), (C_HID, C_HID, K), (C_HID, C_HID, K)]
    pool_sizes = [POOL, POOL, POOL]

    key = jax.random.PRNGKey(0)
    key, xk, pk = jax.random.split(key, 3)
    x = jax.random.normal(xk, (B, C0, L0), jnp.float32)  # NCL, like torch Conv1d input
    params = init_params(pk, layer_cfgs)

    fwd = jax.jit(lambda inp: fake_bert_cnn_forward(inp, params, pool_sizes))
    out = jax.block_until_ready(fwd(x))

    ref = ref_forward(x, params, pool_sizes)
    assert out.shape == ref.shape == (B, C_HID, 1), (out.shape, ref.shape)
    np.testing.assert_allclose(np.asarray(out), np.asarray(ref), rtol=2e-2, atol=2e-2)

    print("KERNEL_OK")
</pallas_src>

<mosaic_0001>
module attributes {stable_mosaic.version = 11 : i64} {
  func.func @_fused_cnn_kernel(%arg0: i32, %arg1: memref<1x256x8xf32, #tpu.memory_space<vmem>>, %arg2: memref<40x32xf32, #tpu.memory_space<vmem>>, %arg3: memref<1x32xf32, #tpu.memory_space<vmem>>, %arg4: memref<160x32xf32, #tpu.memory_space<vmem>>, %arg5: memref<1x32xf32, #tpu.memory_space<vmem>>, %arg6: memref<160x32xf32, #tpu.memory_space<vmem>>, %arg7: memref<1x32xf32, #tpu.memory_space<vmem>>, %arg8: memref<1x1x32xf32, #tpu.memory_space<vmem>>, %arg9: memref<252x32xf32, #tpu.memory_space<vmem>>, %arg10: memref<46x32xf32, #tpu.memory_space<vmem>>, %arg11: memref<5x32xf32, #tpu.memory_space<vmem>>) attributes {dimension_semantics = [#tpu.dimension_semantics<parallel>], iteration_bounds = array<i64: 2>, scalar_prefetch = 0 : i64, scratch_operands = 3 : i64, tpu.core_type = #tpu.core_type<tc>, window_params = [{transform_indices = @transform_0, window_bounds = array<i64: 1, 256, 8>}, {pipeline_mode = #tpu.pipeline_mode<synchronous>, transform_indices = @transform_1, window_bounds = array<i64: 40, 32>}, {pipeline_mode = #tpu.pipeline_mode<synchronous>, transform_indices = @transform_2, window_bounds = array<i64: 1, 32>}, {pipeline_mode = #tpu.pipeline_mode<synchronous>, transform_indices = @transform_3, window_bounds = array<i64: 160, 32>}, {pipeline_mode = #tpu.pipeline_mode<synchronous>, transform_indices = @transform_4, window_bounds = array<i64: 1, 32>}, {pipeline_mode = #tpu.pipeline_mode<synchronous>, transform_indices = @transform_5, window_bounds = array<i64: 160, 32>}, {pipeline_mode = #tpu.pipeline_mode<synchronous>, transform_indices = @transform_6, window_bounds = array<i64: 1, 32>}, {transform_indices = @transform_7, window_bounds = array<i64: 1, 1, 32>}]} {
    %c0 = arith.constant 0 : index
    %c0_0 = arith.constant 0 : index
    %c0_1 = arith.constant 0 : index
    %0 = vector.load %arg1[%c0, %c0_0, %c0_1] : memref<1x256x8xf32, #tpu.memory_space<vmem>>, vector<1x256x8xf32>
    %1 = vector.shape_cast %0 : vector<1x256x8xf32> to vector<256x8xf32>
    %2 = vector.extract_strided_slice %1 {offsets = [0, 0], sizes = [252, 8], strides = [1, 1]} : vector<256x8xf32> to vector<252x8xf32>
    %3 = vector.extract_strided_slice %1 {offsets = [1, 0], sizes = [252, 8], strides = [1, 1]} : vector<256x8xf32> to vector<252x8xf32>
    %4 = vector.extract_strided_slice %1 {offsets = [2, 0], sizes = [252, 8], strides = [1, 1]} : vector<256x8xf32> to vector<252x8xf32>
    %5 = vector.extract_strided_slice %1 {offsets = [3, 0], sizes = [252, 8], strides = [1, 1]} : vector<256x8xf32> to vector<252x8xf32>
    %6 = vector.extract_strided_slice %1 {offsets = [4, 0], sizes = [252, 8], strides = [1, 1]} : vector<256x8xf32> to vector<252x8xf32>
    %7 = tpu.concatenate %2, %3, %4, %5, %6 in 1 : vector<252x8xf32>, vector<252x8xf32>, vector<252x8xf32>, vector<252x8xf32>, vector<252x8xf32> -> vector<252x40xf32>
    %c0_2 = arith.constant 0 : index
    %c0_3 = arith.constant 0 : index
    %8 = vector.load %arg2[%c0_2, %c0_3] : memref<40x32xf32, #tpu.memory_space<vmem>>, vector<40x32xf32>
    %cst = arith.constant dense<0.000000e+00> : vector<252x32xf32>
    %9 = tpu.matmul %7, %8, %cst {dimension_numbers = #tpu.dot_dimension_numbers<[1], [0], [0], [1], [0, 0, 1, 1], [], []>} : vector<252x40xf32>, vector<40x32xf32>, vector<252x32xf32> -> vector<252x32xf32>
    %c0_4 = arith.constant 0 : index
    %c0_5 = arith.constant 0 : index
    %10 = vector.load %arg3[%c0_4, %c0_5] : memref<1x32xf32, #tpu.memory_space<vmem>>, vector<1x32xf32>
    %11 = vector.broadcast %10 : vector<1x32xf32> to vector<252x32xf32>
    %12 = arith.addf %9, %11 : vector<252x32xf32>
    %c0_6 = arith.constant 0 : index
    %c0_7 = arith.constant 0 : index
    %13 = vector.load %arg9[%c0_6, %c0_7] : memref<252x32xf32, #tpu.memory_space<vmem>>, vector<252x32xf32>
    tpu.vector_store %arg9[%c0_6, %c0_7], %12 {strides = array<i32>} : memref<252x32xf32, #tpu.memory_space<vmem>>, vector<252x32xf32>,
    %c0_8 = arith.constant 0 : index
    %c0_9 = arith.constant 0 : index
    %14 = tpu.strided_load %arg9[%c0_8, %c0_9] {strides = array<i32: 5, 1>} : memref<252x32xf32, #tpu.memory_space<vmem>>, vector<50x32xf32>
    %c1 = arith.constant 1 : index
    %c0_10 = arith.constant 0 : index
    %15 = tpu.strided_load %arg9[%c1, %c0_10] {strides = array<i32: 5, 1>} : memref<252x32xf32, #tpu.memory_space<vmem>>, vector<50x32xf32>
    %16 = arith.maximumf %14, %15 : vector<50x32xf32>
    %c2 = arith.constant 2 : index
    %c0_11 = arith.constant 0 : index
    %17 = tpu.strided_load %arg9[%c2, %c0_11] {strides = array<i32: 5, 1>} : memref<252x32xf32, #tpu.memory_space<vmem>>, vector<50x32xf32>
    %18 = arith.maximumf %16, %17 : vector<50x32xf32>
    %c3 = arith.constant 3 : index
    %c0_12 = arith.constant 0 : index
    %19 = tpu.strided_load %arg9[%c3, %c0_12] {strides = array<i32: 5, 1>} : memref<252x32xf32, #tpu.memory_space<vmem>>, vector<50x32xf32>
    %20 = arith.maximumf %18, %19 : vector<50x32xf32>
    %c4 = arith.constant 4 : index
    %c0_13 = arith.constant 0 : index
    %21 = tpu.strided_load %arg9[%c4, %c0_13] {strides = array<i32: 5, 1>} : memref<252x32xf32, #tpu.memory_space<vmem>>, vector<50x32xf32>
    %22 = arith.maximumf %20, %21 : vector<50x32xf32>
    %23 = vector.extract_strided_slice %22 {offsets = [0, 0], sizes = [46, 32], strides = [1, 1]} : vector<50x32xf32> to vector<46x32xf32>
    %24 = vector.extract_strided_slice %22 {offsets = [1, 0], sizes = [46, 32], strides = [1, 1]} : vector<50x32xf32> to vector<46x32xf32>
    %25 = vector.extract_strided_slice %22 {offsets = [2, 0], sizes = [46, 32], strides = [1, 1]} : vector<50x32xf32> to vector<46x32xf32>
    %26 = vector.extract_strided_slice %22 {offsets = [3, 0], sizes = [46, 32], strides = [1, 1]} : vector<50x32xf32> to vector<46x32xf32>
    %27 = vector.extract_strided_slice %22 {offsets = [4, 0], sizes = [46, 32], strides = [1, 1]} : vector<50x32xf32> to vector<46x32xf32>
    %28 = tpu.concatenate %23, %24, %25, %26, %27 in 1 : vector<46x32xf32>, vector<46x32xf32>, vector<46x32xf32>, vector<46x32xf32>, vector<46x32xf32> -> vector<46x160xf32>
    %c0_14 = arith.constant 0 : index
    %c0_15 = arith.constant 0 : index
    %29 = vector.load %arg4[%c0_14, %c0_15] : memref<160x32xf32, #tpu.memory_space<vmem>>, vector<160x32xf32>
    %cst_16 = arith.constant dense<0.000000e+00> : vector<46x32xf32>
    %30 = tpu.matmul %28, %29, %cst_16 {dimension_numbers = #tpu.dot_dimension_numbers<[1], [0], [0], [1], [0, 0, 1, 1], [], []>} : vector<46x160xf32>, vector<160x32xf32>, vector<46x32xf32> -> vector<46x32xf32>
    %c0_17 = arith.constant 0 : index
    %c0_18 = arith.constant 0 : index
    %31 = vector.load %arg5[%c0_17, %c0_18] : memref<1x32xf32, #tpu.memory_space<vmem>>, vector<1x32xf32>
    %32 = vector.broadcast %31 : vector<1x32xf32> to vector<46x32xf32>
    %33 = arith.addf %30, %32 : vector<46x32xf32>
    %c0_19 = arith.constant 0 : index
    %c0_20 = arith.constant 0 : index
    %34 = vector.load %arg10[%c0_19, %c0_20] : memref<46x32xf32, #tpu.memory_space<vmem>>, vector<46x32xf32>
    tpu.vector_store %arg10[%c0_19, %c0_20], %33 {strides = array<i32>} : memref<46x32xf32, #tpu.memory_space<vmem>>, vector<46x32xf32>,
    %c0_21 = arith.constant 0 : index
    %c0_22 = arith.constant 0 : index
    %35 = tpu.strided_load %arg10[%c0_21, %c0_22] {strides = array<i32: 5, 1>} : memref<46x32xf32, #tpu.memory_space<vmem>>, vector<9x32xf32>
    %c1_23 = arith.constant 1 : index
    %c0_24 = arith.constant 0 : index
    %36 = tpu.strided_load %arg10[%c1_23, %c0_24] {strides = array<i32: 5, 1>} : memref<46x32xf32, #tpu.memory_space<vmem>>, vector<9x32xf32>
    %37 = arith.maximumf %35, %36 : vector<9x32xf32>
    %c2_25 = arith.constant 2 : index
    %c0_26 = arith.constant 0 : index
    %38 = tpu.strided_load %arg10[%c2_25, %c0_26] {strides = array<i32: 5, 1>} : memref<46x32xf32, #tpu.memory_space<vmem>>, vector<9x32xf32>
    %39 = arith.maximumf %37, %38 : vector<9x32xf32>
    %c3_27 = arith.constant 3 : index
    %c0_28 = arith.constant 0 : index
    %40 = tpu.strided_load %arg10[%c3_27, %c0_28] {strides = array<i32: 5, 1>} : memref<46x32xf32, #tpu.memory_space<vmem>>, vector<9x32xf32>
    %41 = arith.maximumf %39, %40 : vector<9x32xf32>
    %c4_29 = arith.constant 4 : index
    %c0_30 = arith.constant 0 : index
    %42 = tpu.strided_load %arg10[%c4_29, %c0_30] {strides = array<i32: 5, 1>} : memref<46x32xf32, #tpu.memory_space<vmem>>, vector<9x32xf32>
    %43 = arith.maximumf %41, %42 : vector<9x32xf32>
    %44 = vector.extract_strided_slice %43 {offsets = [0, 0], sizes = [5, 32], strides = [1, 1]} : vector<9x32xf32> to vector<5x32xf32>
    %45 = vector.extract_strided_slice %43 {offsets = [1, 0], sizes = [5, 32], strides = [1, 1]} : vector<9x32xf32> to vector<5x32xf32>
    %46 = vector.extract_strided_slice %43 {offsets = [2, 0], sizes = [5, 32], strides = [1, 1]} : vector<9x32xf32> to vector<5x32xf32>
    %47 = vector.extract_strided_slice %43 {offsets = [3, 0], sizes = [5, 32], strides = [1, 1]} : vector<9x32xf32> to vector<5x32xf32>
    %48 = vector.extract_strided_slice %43 {offsets = [4, 0], sizes = [5, 32], strides = [1, 1]} : vector<9x32xf32> to vector<5x32xf32>
    %49 = tpu.concatenate %44, %45, %46, %47, %48 in 1 : vector<5x32xf32>, vector<5x32xf32>, vector<5x32xf32>, vector<5x32xf32>, vector<5x32xf32> -> vector<5x160xf32>
    %c0_31 = arith.constant 0 : index
    %c0_32 = arith.constant 0 : index
    %50 = vector.load %arg6[%c0_31, %c0_32] : memref<160x32xf32, #tpu.memory_space<vmem>>, vector<160x32xf32>
    %cst_33 = arith.constant dense<0.000000e+00> : vector<5x32xf32>
    %51 = tpu.matmul %49, %50, %cst_33 {dimension_numbers = #tpu.dot_dimension_numbers<[1], [0], [0], [1], [0, 0, 1, 1], [], []>} : vector<5x160xf32>, vector<160x32xf32>, vector<5x32xf32> -> vector<5x32xf32>
    %c0_34 = arith.constant 0 : index
    %c0_35 = arith.constant 0 : index
    %52 = vector.load %arg7[%c0_34, %c0_35] : memref<1x32xf32, #tpu.memory_space<vmem>>, vector<1x32xf32>
    %53 = vector.broadcast %52 : vector<1x32xf32> to vector<5x32xf32>
    %54 = arith.addf %51, %53 : vector<5x32xf32>
    %c0_36 = arith.constant 0 : index
    %c0_37 = arith.constant 0 : index
    %55 = vector.load %arg11[%c0_36, %c0_37] : memref<5x32xf32, #tpu.memory_space<vmem>>, vector<5x32xf32>
    tpu.vector_store %arg11[%c0_36, %c0_37], %54 {strides = array<i32>} : memref<5x32xf32, #tpu.memory_space<vmem>>, vector<5x32xf32>,
    %c0_38 = arith.constant 0 : index
    %c0_39 = arith.constant 0 : index
    %56 = tpu.strided_load %arg11[%c0_38, %c0_39] {strides = array<i32: 5, 1>} : memref<5x32xf32, #tpu.memory_space<vmem>>, vector<1x32xf32>
    %c1_40 = arith.constant 1 : index
    %c0_41 = arith.constant 0 : index
    %57 = tpu.strided_load %arg11[%c1_40, %c0_41] {strides = array<i32: 5, 1>} : memref<5x32xf32, #tpu.memory_space<vmem>>, vector<1x32xf32>
    %58 = arith.maximumf %56, %57 : vector<1x32xf32>
    %c2_42 = arith.constant 2 : index
    %c0_43 = arith.constant 0 : index
    %59 = tpu.strided_load %arg11[%c2_42, %c0_43] {strides = array<i32: 5, 1>} : memref<5x32xf32, #tpu.memory_space<vmem>>, vector<1x32xf32>
    %60 = arith.maximumf %58, %59 : vector<1x32xf32>
    %c3_44 = arith.constant 3 : index
    %c0_45 = arith.constant 0 : index
    %61 = tpu.strided_load %arg11[%c3_44, %c0_45] {strides = array<i32: 5, 1>} : memref<5x32xf32, #tpu.memory_space<vmem>>, vector<1x32xf32>
    %62 = arith.maximumf %60, %61 : vector<1x32xf32>
    %c4_46 = arith.constant 4 : index
    %c0_47 = arith.constant 0 : index
    %63 = tpu.strided_load %arg11[%c4_46, %c0_47] {strides = array<i32: 5, 1>} : memref<5x32xf32, #tpu.memory_space<vmem>>, vector<1x32xf32>
    %64 = arith.maximumf %62, %63 : vector<1x32xf32>
    %c0_48 = arith.constant 0 : index
    %c0_49 = arith.constant 0 : index
    %c0_50 = arith.constant 0 : index
    %65 = vector.load %arg8[%c0_48, %c0_49, %c0_50] : memref<1x1x32xf32, #tpu.memory_space<vmem>>, vector<1x1x32xf32>
    %66 = vector.shape_cast %65 : vector<1x1x32xf32> to vector<1x32xf32>
    %67 = vector.shape_cast %64 : vector<1x32xf32> to vector<1x1x32xf32>
    tpu.vector_store %arg8[%c0_48, %c0_49, %c0_50], %67 {strides = array<i32>} : memref<1x1x32xf32, #tpu.memory_space<vmem>>, vector<1x1x32xf32>,
    return
  }
  func.func @transform_0(%arg0: i32) -> (i32, i32, i32) {
    %c0_i32 = arith.constant 0 : i32
    %c0_i32_0 = arith.constant 0 : i32
    %c0_i32_1 = arith.constant 0 : i32
    return %arg0, %c0_i32, %c0_i32_0 : i32, i32, i32
  }
  func.func @transform_1(%arg0: i32) -> (i32, i32) {
    %c0_i32 = arith.constant 0 : i32
    %c0_i32_0 = arith.constant 0 : i32
    %c0_i32_1 = arith.constant 0 : i32
    return %c0_i32, %c0_i32_0 : i32, i32
  }
  func.func @transform_2(%arg0: i32) -> (i32, i32) {
    %c0_i32 = arith.constant 0 : i32
    %c0_i32_0 = arith.constant 0 : i32
    %c0_i32_1 = arith.constant 0 : i32
    return %c0_i32, %c0_i32_0 : i32, i32
  }
  func.func @transform_3(%arg0: i32) -> (i32, i32) {
    %c0_i32 = arith.constant 0 : i32
    %c0_i32_0 = arith.constant 0 : i32
    %c0_i32_1 = arith.constant 0 : i32
    return %c0_i32, %c0_i32_0 : i32, i32
  }
  func.func @transform_4(%arg0: i32) -> (i32, i32) {
    %c0_i32 = arith.constant 0 : i32
    %c0_i32_0 = arith.constant 0 : i32
    %c0_i32_1 = arith.constant 0 : i32
    return %c0_i32, %c0_i32_0 : i32, i32
  }
  func.func @transform_5(%arg0: i32) -> (i32, i32) {
    %c0_i32 = arith.constant 0 : i32
    %c0_i32_0 = arith.constant 0 : i32
    %c0_i32_1 = arith.constant 0 : i32
    return %c0_i32, %c0_i32_0 : i32, i32
  }
  func.func @transform_6(%arg0: i32) -> (i32, i32) {
    %c0_i32 = arith.constant 0 : i32
    %c0_i32_0 = arith.constant 0 : i32
    %c0_i32_1 = arith.constant 0 : i32
    return %c0_i32, %c0_i32_0 : i32, i32
  }
  func.func @transform_7(%arg0: i32) -> (i32, i32, i32) {
    %c0_i32 = arith.constant 0 : i32
    %c0_i32_0 = arith.constant 0 : i32
    %c0_i32_1 = arith.constant 0 : i32
    return %arg0, %c0_i32, %c0_i32_0 : i32, i32, i32
  }
}

</mosaic_0001>

<bundles_post_ra>
// kernel: _lambda_.1
= control target key start
LH: loop header
LB: loop body
LE: loop exit
PB: predicated region body
PF: predicated region fallthrough
CT: control target
= control target key end

     0   :  { %12 = vsyncpa [#allocation6], 0  ;;  %s3655_s0 = inlined_call_operand.vmem [shape: f32[2,256,8], index: 0, kind: input, shape index: {}]   ;;  %s3656_s1 = inlined_call_operand.vmem [shape: f32[40,32], index: 1, kind: input, shape index: {}]   ;;  %s3657_s2 = inlined_call_operand.vmem [shape: f32[1,32], index: 2, kind: input, shape index: {}]   ;;  %s3658_s3 = inlined_call_operand.vmem [shape: f32[160,32], index: 3, kind: input, shape index: {}]   ;;  %s3659_s4 = inlined_call_operand.vmem [shape: f32[1,32], index: 4, kind: input, shape index: {}]   ;;  %s3660_s5 = inlined_call_operand.vmem [shape: f32[160,32], index: 5, kind: input, shape index: {}]   ;;  %s3661_s6 = inlined_call_operand.vmem [shape: f32[1,32], index: 6, kind: input, shape index: {}]   ;;  %s3662_s7 = inlined_call_operand.hbm [shape: f32[2,1,32], index: 7, kind: output, shape index: {}]  }
   0x1   :  { %14 = vsyncpa [#allocation6 + $0x1], 0  ;;  %s2415_s24 = smov 0   ;;  %s2417_s25 = smov 0  }
   0x2   :  { %s2419_s26 = smov 0   ;;  %s2421_s27 = smov 0  }
   0x3 LB: > { %s2436_s28 = sadd.s32 4294967295, %s2365_s27   ;;  %s2077_s29 = sadd.s32 4294967294, %s2365_s27   ;;  %s2365_s27 = sphi %s2421_s27, %s3668_s27   ;;  %s2361_s26 = sphi %s2419_s26, %s3667_s26   ;;  %s2357_s25 = sphi %s2417_s25, %s3666_s25   ;;  %s2353_s24 = sphi %s2415_s24, %s3665_s24  }
   0x4   : > { %s2440_s30 = sadd.s32 1, %s2365_s27   ;;  %s179_s8 = sadd.s32 1, %s2361_s26 }
   0x5   : > { %s176_s9 = ssub.s32 %s2365_s27, %s2440_s30  ;;  %p189_p0 = scmp.ne.s32.totalorder %s2361_s26, %s2357_s25 }
   0x6   : > { %p177_p1 = scmp.eq.s32.totalorder %s176_s9, 0  ;;  %p190_p2 = scmp.eq.s32.totalorder %s2436_s28, 1 }
   0x7   : > { %p195_p3 = scmp.ne.s32.totalorder %s2357_s25, %s2353_s24  ;;  %p196_p4 = scmp.eq.s32.totalorder %s2077_s29, 1 }
   0x8   : > { %s2451_s10 = scalar_select %p177_p1, %s2361_s26, %s179_s8  }
   0x9   : > { %p2453_p5 = por %p190_p2, %p189_p0  ;;  %p2457_p6 = por %p196_p4, %p195_p3 }
   0xa   : > { %p2080_p7 = scmp.ge.s32.totalorder %s2365_s27, 1  ;;  %p240_p8 = scmp.lt.s32.totalorder %s2365_s27, 3 }
   0xc   : > { %p241_p9 = pnand %p2080_p7, %p240_p8 }
   0xd   : > { %p271_p10 = scmp.lt.s32.totalorder (!%p241_p9), %s2436_s28, 1  ;;  %s2367_s22 = smov (!%p241_p9), 16  }
   0xe   : > { %244 = sbr.rel (%p241_p9) target bundleno = 1273 (0x4f9), region = 48  ;;  %s2368_s23 = smov (!%p241_p9), 8  }
   0xf   : > { %s2370_s17 = smov (!%p241_p9), 32   ;;  %s2372_s21 = smov (!%p241_p9), 64  }
  0x10   : > { %s2374_s15 = smov (!%p241_p9), [#allocation5]  }
  0x13   : > { %s272_s13 = scalar_select %p271_p10, %s2436_s28, 1  ;;  %v1116_v0 = vld [vmem:[%s3656_s1 + $0x20] sm:$0xff]  ;;  %v1115_v1 = vld [vmem:[%s3656_s1 + $0x18] sm:$0xff]  ;;  %vm500_vm0 = vcmask 1045504   ;;  %vm340_vm1 = vcmask 1046528   ;;  %vm660_vm2 = vcmask 1044480  }
  0x14   : > { %2166 = vmatprep.subr.mxu0 %v1116_v0  ;;  %2224 = vmatprep.subr.mxu1 %v1116_v0  ;;  %v1114_v20 = vld [vmem:[%s3656_s1 + $0x10] sm:$0xff]  ;;  %v1113_v21 = vld [vmem:[%s3656_s1 + $0x8] sm:$0xff]  ;;  %vm820_vm3 = vcmask 1043456   ;;  %v1112_v27 = vld [vmem:[%s3656_s1] sm:$0xff]  ;;  %vm980_vm4 = vcmask 64512   ;;  %vm1013_vm5 = vcmask 130048  }
  0x15   : > { %s2128_s16 = sshll.u32 %s272_s13, 8  ;;  %2167 = vmatpush3.msra.mxu0 %v1116_v0  ;;  %2229 = vmatpush3.msra.mxu1 %v1116_v0  ;;  %vm1046_vm6 = vcmask 195584   ;;  %vm1079_vm7 = vcmask 261120   ;;  %vm1124_vm8 = vcmask 326656   ;;  %vm1477_vm9 = vcmask 257024  }
  0x16   : > { %s2471_s19 = scalar_lea.vmem %s3655_s0, %s2128_s16  ;;  %2168 = vmatprep.subr.mxu0 %v1115_v1  ;;  %2225 = vmatprep.subr.mxu1 %v1115_v1  ;;  %s2369_s16 = smov 24   ;;  %vm1691_vm10 = vcmask 523264   ;;  %vm1698_vm11 = vcmask 785408   ;;  %vm1844_vm12 = vcmask 259072   ;;  %vm1992_vm13 = vcmask 258048  }
  0x17   : > { %v2477_v2 = vld [vmem:[%s2471_s19] sm:$0xff]  ;;  %v2480_v3 = vld [vmem:[%s2471_s19 + $0x8] sm:$0xff]  ;;  %v2483_v4 = vld [vmem:[%s2471_s19 + $0x10] sm:$0xff]  ;;  %2169 = vmatpush3.msra.mxu0 %v1115_v1  ;;  %2230 = vmatpush3.msra.mxu1 %v1115_v1  ;;  %vm2007_vm14 = vcmask 253952  }
  0x18   : > { %v501_v5 = vrot.slane %v2477_v2, 2  ;;  %v502_v6 = vrot.slane %v2480_v3, 2  ;;  %v341_v7 = vrot.slane %v2477_v2, 1  ;;  %v342_v8 = vrot.slane %v2480_v3, 1  ;;  %v2501_v18 = vld [vmem:[%s2471_s19 + $0x18] sm:$0xff]  ;;  %2170 = vmatprep.subr.mxu0 %v1114_v20  ;;  %2226 = vmatprep.subr.mxu1 %v1114_v20  ;;  %v2517_v26 = vld [vmem:[%s2471_s19 + $0x20] sm:$0xff] }
  0x19   : > { %v504_v9 = vrot.slane %v2483_v4, 2  ;;  %v344_v10 = vrot.slane %v2483_v4, 1  ;;  %v662_v13 = vrot.slane %v2480_v3, 3  ;;  %v664_v16 = vrot.slane %v2483_v4, 3  ;;  %2171 = vmatpush3.msra.mxu0 %v1114_v20  ;;  %2231 = vmatpush3.msra.mxu1 %v1114_v20  ;;  %v2541_v40 = vld [vmem:[%s2471_s19 + $0x28] sm:$0xff]  ;;  %v2550_v45 = vld [vmem:[%s2471_s19 + $0x30] sm:$0xff] }
  0x1a   : > { %v503_v11 = vsel %vm500_vm0, %v501_v5, %v502_v6  ;;  %v343_v12 = vsel %vm340_vm1, %v341_v7, %v342_v8  ;;  %v661_v17 = vrot.slane %v2477_v2, 3  ;;  %v346_v19 = vrot.slane %v2501_v18, 1  ;;  %2172 = vmatprep.subr.mxu0 %v1113_v21  ;;  %2227 = vmatprep.subr.mxu1 %v1113_v21  ;;  %v2571_v58 = vld [vmem:[%s2471_s19 + $0x38] sm:$0xff]  ;;  %v2580_v63 = vld [vmem:[%s2471_s19 + $0x40] sm:$0xff] }
  0x1b   : > { %564 = vrot.lane.b32.xlu1 %v503_v11, %s2367_s22  ;;  %404 = vrot.lane.b32.xlu0 %v343_v12, %s2368_s23  ;;  %v505_v14 = vsel %vm500_vm0, %v502_v6, %v504_v9  ;;  %v345_v15 = vsel %vm340_vm1, %v342_v8, %v344_v10  ;;  %v665_v22 = vsel %vm660_vm2, %v662_v13, %v664_v16  ;;  %v821_v24 = vrot.slane %v2477_v2, 4 }
  0x1c   : > { %v663_v23 = vsel %vm660_vm2, %v661_v17, %v662_v13  ;;  %v822_v25 = vrot.slane %v2480_v3, 4  ;;  %v347_v28 = vsel %vm340_vm1, %v344_v10, %v346_v19  ;;  %v348_v30 = vrot.slane %v2517_v26, 1  ;;  %2173 = vmatpush3.msra.mxu0 %v1113_v21  ;;  %2232 = vmatpush3.msra.mxu1 %v1113_v21  ;;  %v2610_v21 = vld [vmem:[%s2471_s19 + $0x50] sm:$0xff] }
  0x1d   : > { %v824_v31 = vrot.slane %v2483_v4, 4  ;;  %2174 = vmatprep.subr.mxu0 %v1112_v27  ;;  %2228 = vmatprep.subr.mxu1 %v1112_v27  ;;  %v506_v34 = vrot.slane %v2501_v18, 2  ;;  %v508_v35 = vrot.slane %v2517_v26, 2  ;;  %v666_v38 = vrot.slane %v2501_v18, 3 }
  0x1e   : > { %v823_v29 = vsel %vm820_vm3, %v821_v24, %v822_v25  ;;  %2175 = vmatpush3.msra.mxu0 %v1112_v27  ;;  %2233 = vmatpush3.msra.mxu1 %v1112_v27  ;;  %v349_v32 = vsel %vm340_vm1, %v346_v19, %v348_v30  ;;  %v668_v39 = vrot.slane %v2517_v26, 3  ;;  %v350_v43 = vrot.slane %v2541_v40, 1 }
  0x1f   : > { %566 = vrot.lane.b32.xlu1 %v505_v14, %s2367_s22  ;;  %406 = vrot.lane.b32.xlu0 %v345_v15, %s2368_s23  ;;  %v825_v33 = vsel %vm820_vm3, %v822_v25, %v824_v31  ;;  %v509_v36 = vsel %vm500_vm0, %v506_v34, %v508_v35  ;;  %v507_v37 = vsel %vm500_vm0, %v504_v9, %v506_v34  ;;  %v826_v44 = vrot.slane %v2501_v18, 4  ;;  %v2601_v15 = vld [vmem:[%s2471_s19 + $0x48] sm:$0xff] }
  0x20   : > { %v669_v41 = vsel %vm660_vm2, %v666_v38, %v668_v39  ;;  %v667_v42 = vsel %vm660_vm2, %v664_v16, %v666_v38  ;;  %v351_v46 = vsel %vm340_vm1, %v348_v30, %v350_v43  ;;  %v352_v48 = vrot.slane %v2550_v45, 1 }
  0x21   : > { %v827_v47 = vsel %vm820_vm3, %v824_v31, %v826_v44  ;;  %v828_v49 = vrot.slane %v2517_v26, 4  ;;  %v510_v52 = vrot.slane %v2541_v40, 2  ;;  %v512_v53 = vrot.slane %v2550_v45, 2 }
  0x22   : > { %v353_v50 = vsel %vm340_vm1, %v350_v43, %v352_v48  ;;  %v670_v56 = vrot.slane %v2541_v40, 3  ;;  %v672_v57 = vrot.slane %v2550_v45, 3  ;;  %v354_v61 = vrot.slane %v2571_v58, 1 }
  0x23   : > { %726 = vrot.lane.b32.xlu1 %v665_v22, %s2369_s16  ;;  %724 = vrot.lane.b32.xlu0 %v663_v23, %s2369_s16  ;;  %v829_v51 = vsel %vm820_vm3, %v826_v44, %v828_v49  ;;  %v513_v54 = vsel %vm500_vm0, %v510_v52, %v512_v53  ;;  %v511_v55 = vsel %vm500_vm0, %v508_v35, %v510_v52  ;;  %v830_v62 = vrot.slane %v2541_v40, 4  ;;  %v2631_v35 = vld [vmem:[%s2471_s19 + $0x58] sm:$0xff] }
  0x24   : > { %v673_v59 = vsel %vm660_vm2, %v670_v56, %v672_v57  ;;  %v671_v60 = vsel %vm660_vm2, %v668_v39, %v670_v56  ;;  %v355_v0 = vsel %vm340_vm1, %v352_v48, %v354_v61  ;;  %v356_v5 = vrot.slane %v2580_v63, 1 }
  0x25   : > { %v831_v1 = vsel %vm820_vm3, %v828_v49, %v830_v62  ;;  %v832_v6 = vrot.slane %v2550_v45, 4  ;;  %v514_v9 = vrot.slane %v2571_v58, 2  ;;  %v516_v10 = vrot.slane %v2580_v63, 2 }
  0x26   : > { %v357_v7 = vsel %vm340_vm1, %v354_v61, %v356_v5  ;;  %v674_v13 = vrot.slane %v2571_v58, 3  ;;  %v676_v14 = vrot.slane %v2580_v63, 3  ;;  %v358_v19 = vrot.slane %v2601_v15, 1  ;;  %v2670_v61 = vld [vmem:[%s2471_s19 + $0x70] sm:$0xff] }
  0x27   : > { %408 = vrot.lane.b32.xlu1 %v347_v28, %s2368_s23  ;;  %884 = vrot.lane.b32.xlu0 %v823_v29, %s2370_s17  ;;  %v833_v8 = vsel %vm820_vm3, %v830_v62, %v832_v6  ;;  %v517_v11 = vsel %vm500_vm0, %v514_v9, %v516_v10  ;;  %v515_v12 = vsel %vm500_vm0, %v512_v53, %v514_v9  ;;  %v834_v20 = vrot.slane %v2571_v58, 4 }
  0x28   : > { %v677_v16 = vsel %vm660_vm2, %v674_v13, %v676_v14  ;;  %v675_v17 = vsel %vm660_vm2, %v672_v57, %v674_v13  ;;  %v359_v22 = vsel %vm340_vm1, %v356_v5, %v358_v19  ;;  %v360_v24 = vrot.slane %v2610_v21, 1 }
  0x29   : > { %v835_v23 = vsel %vm820_vm3, %v832_v6, %v834_v20  ;;  %v836_v25 = vrot.slane %v2580_v63, 4  ;;  %v518_v29 = vrot.slane %v2601_v15, 2  ;;  %v520_v30 = vrot.slane %v2610_v21, 2 }
  0x2a   : > { %v361_v27 = vsel %vm340_vm1, %v358_v19, %v360_v24  ;;  %v680_v34 = vrot.slane %v2610_v21, 3  ;;  %v362_v38 = vrot.slane %v2631_v35, 1  ;;  %v838_v39 = vrot.slane %v2601_v15, 4 }
  0x2b   : > { %410 = vrot.lane.b32.xlu1 %v349_v32, %s2368_s23  ;;  %886 = vrot.lane.b32.xlu0 %v825_v33, %s2370_s17  ;;  %v837_v28 = vsel %vm820_vm3, %v834_v20, %v836_v25  ;;  %v521_v31 = vsel %vm500_vm0, %v518_v29, %v520_v30  ;;  %v519_v32 = vsel %vm500_vm0, %v516_v10, %v518_v29  ;;  %v678_v33 = vrot.slane %v2601_v15, 3 }
  0x2c   : > { %v839_v43 = vsel %vm820_vm3, %v836_v25, %v838_v39  ;;  %v522_v49 = vrot.slane %v2631_v35, 2  ;;  %v682_v53 = vrot.slane %v2631_v35, 3  ;;  %v528_v9 = vrot.slane %v2670_v61, 2 }
  0x2d   : > { %v688_v13 = vrot.slane %v2670_v61, 3 }
  0x2e   : > { %v523_v52 = vsel %vm500_vm0, %v520_v30, %v522_v49  ;;  %v683_v57 = vsel %vm660_vm2, %v680_v34, %v682_v53  ;;  %v2713_v30 = vld [vmem:[%s2471_s19 + $0xb0] sm:$0xff] }
  0x2f   : > { %570 = vrot.lane.b32.xlu1 %v509_v36, %s2367_s22  ;;  %568 = vrot.lane.b32.xlu0 %v507_v37, %s2367_s22  ;;  %v681_v36 = vsel %vm660_vm2, %v678_v33, %v680_v34  ;;  %v679_v37 = vsel %vm660_vm2, %v676_v14, %v678_v33  ;;  %v2691_v14 = vld [vmem:[%s2471_s19 + $0x78] sm:$0xff]  ;;  %v384_v34 = vrot.slane %v2713_v30, 1 }
  0x33   : > { %730 = vrot.lane.b32.xlu1 %v669_v41, %s2369_s16  ;;  %728 = vrot.lane.b32.xlu0 %v667_v42, %s2369_s16  ;;  %v2640_v41 = vld [vmem:[%s2471_s19 + $0x60] sm:$0xff]  ;;  %v363_v42 = vsel %vm340_vm1, %v360_v24, %v362_v38 }
  0x34   : > { %v364_v44 = vrot.slane %v2640_v41, 1  ;;  %v844_v5 = vrot.slane %v2640_v41, 4 }
  0x37   : > { %412 = vrot.lane.b32.xlu1 %v351_v46, %s2368_s23  ;;  %888 = vrot.lane.b32.xlu0 %v827_v47, %s2370_s17  ;;  %v840_v46 = vrot.slane %v2610_v21, 4  ;;  %v365_v47 = vsel %vm340_vm1, %v362_v38, %v364_v44 }
  0x39   : > { %v841_v48 = vsel %vm820_vm3, %v838_v39, %v840_v46 }
  0x3b   : > { %414 = vrot.lane.b32.xlu1 %v353_v50, %s2368_s23  ;;  %890 = vrot.lane.b32.xlu0 %v829_v51, %s2370_s17  ;;  %v524_v50 = vrot.slane %v2640_v41, 2 }
  0x3d   : > { %v525_v51 = vsel %vm500_vm0, %v522_v49, %v524_v50  ;;  %v544_v49 = vrot.slane %v2713_v30, 2 }
  0x3f   : > { %574 = vrot.lane.b32.xlu1 %v513_v54, %s2367_s22  ;;  %572 = vrot.lane.b32.xlu0 %v511_v55, %s2367_s22  ;;  %v684_v54 = vrot.slane %v2640_v41, 3  ;;  %v2661_v55 = vld [vmem:[%s2471_s19 + $0x68] sm:$0xff] }
  0x40   : > { %v846_v20 = vrot.slane %v2661_v55, 4 }
  0x41   : > { %v685_v56 = vsel %vm660_vm2, %v682_v53, %v684_v54 }
  0x42   : > { %v847_v25 = vsel %vm820_vm3, %v844_v5, %v846_v20 }
  0x43   : > { %734 = vrot.lane.b32.xlu1 %v673_v59, %s2369_s16  ;;  %732 = vrot.lane.b32.xlu0 %v671_v60, %s2369_s16  ;;  %v366_v59 = vrot.slane %v2661_v55, 1  ;;  %v842_v60 = vrot.slane %v2631_v35, 4 }
  0x45   : > { %v367_v62 = vsel %vm340_vm1, %v364_v44, %v366_v59 }
  0x47   : > { %416 = vrot.lane.b32.xlu1 %v355_v0, %s2368_s23  ;;  %892 = vrot.lane.b32.xlu0 %v831_v1, %s2370_s17  ;;  %v843_v0 = vsel %vm820_vm3, %v840_v46, %v842_v60  ;;  %v368_v1 = vrot.slane %v2670_v61, 1 }
  0x49   : > { %v369_v6 = vsel %vm340_vm1, %v366_v59, %v368_v1  ;;  %v690_v59 = vrot.slane %v2691_v14, 3 }
  0x4b   : > { %418 = vrot.lane.b32.xlu1 %v357_v7, %s2368_s23  ;;  %894 = vrot.lane.b32.xlu0 %v833_v8, %s2370_s17  ;;  %v845_v7 = vsel %vm820_vm3, %v842_v60, %v844_v5  ;;  %v526_v8 = vrot.slane %v2661_v55, 2 }
  0x4d   : > { %v529_v10 = vsel %vm500_vm0, %v526_v8, %v528_v9 }
  0x4f   : > { %578 = vrot.lane.b32.xlu1 %v517_v11, %s2367_s22  ;;  %576 = vrot.lane.b32.xlu0 %v515_v12, %s2367_s22  ;;  %v527_v11 = vsel %vm500_vm0, %v524_v50, %v526_v8  ;;  %v686_v12 = vrot.slane %v2661_v55, 3 }
  0x51   : > { %v687_v19 = vsel %vm660_vm2, %v684_v54, %v686_v12 }
  0x53   : > { %738 = vrot.lane.b32.xlu1 %v677_v16, %s2369_s16  ;;  %736 = vrot.lane.b32.xlu0 %v675_v17, %s2369_s16  ;;  %v370_v16 = vrot.slane %v2691_v14, 1  ;;  %v689_v17 = vsel %vm660_vm2, %v686_v12, %v688_v13 }
  0x55   : > { %v371_v24 = vsel %vm340_vm1, %v368_v1, %v370_v16  ;;  %v704_v1 = vrot.slane %v2713_v30, 3 }
  0x57   : > { %420 = vrot.lane.b32.xlu1 %v359_v22, %s2368_s23  ;;  %896 = vrot.lane.b32.xlu0 %v835_v23, %s2370_s17  ;;  %v2700_v22 = vld [vmem:[%s2471_s19 + $0xa0] sm:$0xff]  ;;  %v2703_v23 = vld [vmem:[%s2471_s19 + $0xa8] sm:$0xff] }
  0x58   : > { %v382_v29 = vrot.slane %v2703_v23, 1  ;;  %v700_v53 = vrot.slane %v2700_v22, 3 }
  0x5a   : > { %v385_v38 = vsel %vm340_vm1, %v382_v29, %v384_v34 }
  0x5b   : > { %422 = vrot.lane.b32.xlu1 %v361_v27, %s2368_s23  ;;  %898 = vrot.lane.b32.xlu0 %v837_v28, %s2370_s17  ;;  %v848_v27 = vrot.slane %v2670_v61, 4  ;;  %v380_v28 = vrot.slane %v2700_v22, 1 }
  0x5d   : > { %v383_v33 = vsel %vm340_vm1, %v380_v28, %v382_v29 }
  0x5f   : > { %582 = vrot.lane.b32.xlu1 %v521_v31, %s2367_s22  ;;  %580 = vrot.lane.b32.xlu0 %v519_v32, %s2367_s22  ;;  %v2716_v31 = vld [vmem:[%s2471_s19 + $0x80] sm:$0xff]  ;;  %v849_v32 = vsel %vm820_vm3, %v846_v20, %v848_v27  ;;  %v850_v20 = vrot.slane %v2691_v14, 4 }
  0x60   : > { %v532_v50 = vrot.slane %v2716_v31, 2 }
  0x63   : > { %742 = vrot.lane.b32.xlu1 %v681_v36, %s2369_s16  ;;  %740 = vrot.lane.b32.xlu0 %v679_v37, %s2369_s16  ;;  %v372_v36 = vrot.slane %v2716_v31, 1  ;;  %v540_v37 = vrot.slane %v2700_v22, 2 }
  0x65   : > { %v373_v39 = vsel %vm340_vm1, %v370_v16, %v372_v36  ;;  %v860_v16 = vrot.slane %v2700_v22, 4 }
  0x67   : > { %424 = vrot.lane.b32.xlu1 %v363_v42, %s2368_s23  ;;  %900 = vrot.lane.b32.xlu0 %v839_v43, %s2370_s17  ;;  %v542_v42 = vrot.slane %v2703_v23, 2  ;;  %v530_v43 = vrot.slane %v2691_v14, 2 }
  0x69   : > { %v545_v54 = vsel %vm500_vm0, %v542_v42, %v544_v49 }
  0x6b   : > { %426 = vrot.lane.b32.xlu1 %v365_v47, %s2368_s23  ;;  %902 = vrot.lane.b32.xlu0 %v841_v48, %s2370_s17  ;;  %v543_v47 = vsel %vm500_vm0, %v540_v37, %v542_v42  ;;  %v531_v48 = vsel %vm500_vm0, %v528_v9, %v530_v43  ;;  %v851_v42 = vsel %vm820_vm3, %v848_v27, %v850_v20  ;;  %v864_v27 = vrot.slane %v2713_v30, 4 }
  0x6f   : > { %586 = vrot.lane.b32.xlu1 %v525_v51, %s2367_s22  ;;  %584 = vrot.lane.b32.xlu0 %v523_v52, %s2367_s22 }
  0x73   : > { %746 = vrot.lane.b32.xlu1 %v685_v56, %s2369_s16  ;;  %744 = vrot.lane.b32.xlu0 %v683_v57, %s2369_s16  ;;  %v533_v56 = vsel %vm500_vm0, %v530_v43, %v532_v50  ;;  %v702_v57 = vrot.slane %v2703_v23, 3 }
  0x77   : > { %428 = vrot.lane.b32.xlu1 %v367_v62, %s2368_s23  ;;  %904 = vrot.lane.b32.xlu0 %v843_v0, %s2370_s17 }
  0x7b   : > { %430 = vrot.lane.b32.xlu1 %v369_v6, %s2368_s23  ;;  %906 = vrot.lane.b32.xlu0 %v845_v7, %s2370_s17  ;;  %v703_v6 = vsel %vm660_vm2, %v700_v53, %v702_v57  ;;  %v691_v7 = vsel %vm660_vm2, %v688_v13, %v690_v59  ;;  %v705_v13 = vsel %vm660_vm2, %v702_v57, %v704_v1 }
  0x7f   : > { %590 = vrot.lane.b32.xlu1 %v529_v10, %s2367_s22  ;;  %588 = vrot.lane.b32.xlu0 %v527_v11, %s2367_s22 }
  0x83   : > { %750 = vrot.lane.b32.xlu1 %v689_v17, %s2369_s16  ;;  %748 = vrot.lane.b32.xlu0 %v687_v19, %s2369_s16  ;;  %v862_v19 = vrot.slane %v2703_v23, 4 }
  0x87   : > { %432 = vrot.lane.b32.xlu1 %v371_v24, %s2368_s23  ;;  %908 = vrot.lane.b32.xlu0 %v847_v25, %s2370_s17 }
  0x8b   : > { %910 = vrot.lane.b32.xlu1 %v849_v32, %s2370_s17  ;;  %444 = vrot.lane.b32.xlu0 %v383_v33, %s2368_s23  ;;  %v2788_v32 = vld [vmem:[%s2471_s19 + $0xb8] sm:$0xff]  ;;  %v2791_v33 = vld [vmem:[%s2471_s19 + $0x88] sm:$0xff] }
  0x8c   : > { %v386_v43 = vrot.slane %v2788_v32, 1 }
  0x8d   : > { %v565_v44 = vpop.permute.xlu1 %564  ;;  %v405_v46 = vpop.permute.xlu0 %404 }
  0x8e   : > { %v981_v60 = vsel %vm980_vm4, %v2477_v2, %v405_v46  ;;  %v692_v2 = vrot.slane %v2716_v31, 3 }
  0x8f   : > { %446 = vrot.lane.b32.xlu1 %v385_v38, %s2368_s23  ;;  %434 = vrot.lane.b32.xlu0 %v373_v39, %s2368_s23  ;;  %v1014_v5 = vsel %vm1013_vm5, %v981_v60, %v565_v44  ;;  %v863_v39 = vsel %vm820_vm3, %v860_v16, %v862_v19  ;;  %v374_v44 = vrot.slane %v2791_v33, 1 }
  0x90   : > { %v693_v17 = vsel %vm660_vm2, %v690_v59, %v692_v2  ;;  %v2819_v59 = vld [vmem:[%s2471_s19 + $0x90] sm:$0xff] }
  0x91   : > { %v567_v51 = vpop.permute.xlu1 %566  ;;  %v407_v52 = vpop.permute.xlu0 %406 }
  0x92   : > { %v982_v8 = vsel %vm980_vm4, %v2480_v3, %v407_v52  ;;  %v852_v52 = vrot.slane %v2716_v31, 4 }
  0x93   : > { %604 = vrot.lane.b32.xlu1 %v543_v47, %s2367_s22  ;;  %592 = vrot.lane.b32.xlu0 %v531_v48, %s2367_s22  ;;  %v1015_v3 = vsel %vm1013_vm5, %v982_v8, %v567_v51  ;;  %v387_v48 = vsel %vm340_vm1, %v384_v34, %v386_v43  ;;  %v375_v51 = vsel %vm340_vm1, %v372_v36, %v374_v44 }
  0x95   : > { %v727_v62 = vpop.permute.xlu1 %726  ;;  %v725_v0 = vpop.permute.xlu0 %724 }
  0x96   : > { %v1047_v9 = vsel %vm1046_vm6, %v1014_v5, %v725_v0  ;;  %v1048_v24 = vsel %vm1046_vm6, %v1015_v3, %v727_v62  ;;  %v865_v62 = vsel %vm820_vm3, %v862_v19, %v864_v27  ;;  %v853_v0 = vsel %vm820_vm3, %v850_v20, %v852_v52 }
  0x97   : > { %606 = vrot.lane.b32.xlu1 %v545_v54, %s2367_s22  ;;  %594 = vrot.lane.b32.xlu0 %v533_v56, %s2367_s22  ;;  %v2816_v54 = vld [vmem:[%s2471_s19 + $0xc0] sm:$0xff]  ;;  %v376_v5 = vrot.slane %v2819_v59, 1 }
  0x98   : > { %v388_v34 = vrot.slane %v2816_v54, 1 }
  0x99   : > { %v409_v10 = vpop.permute.xlu1 %408  ;;  %v885_v11 = vpop.permute.xlu0 %884 }
  0x9a   : > { %v1080_v12 = vsel %vm1079_vm7, %v1047_v9, %v885_v11  ;;  %v983_v60 = vsel %vm980_vm4, %v2483_v4, %v409_v10  ;;  %v389_v10 = vsel %vm340_vm1, %v386_v43, %v388_v34 }
  0x9b   : > { %764 = vrot.lane.b32.xlu1 %v703_v6, %s2369_s16  ;;  %752 = vrot.lane.b32.xlu0 %v691_v7, %s2369_s16 }
  0x9c   : > { %2176 = vmatprep.mubr.msk.f32.mxu0 %vm1124_vm8, %v1080_v12  ;;  %v377_v12 = vsel %vm340_vm1, %v374_v44, %v376_v5  ;;  %v694_v44 = vrot.slane %v2791_v33, 3 }
  0x9d   : > { %v411_v25 = vpop.permute.xlu1 %410  ;;  %v887_v29 = vpop.permute.xlu0 %886 }
  0x9e   : > { %v1081_v38 = vsel %vm1079_vm7, %v1048_v24, %v887_v29  ;;  %v984_v9 = vsel %vm980_vm4, %v2501_v18, %v411_v25  ;;  %v534_v18 = vrot.slane %v2791_v33, 2  ;;  %v548_v29 = vrot.slane %v2816_v54, 2 }
  0x9f   : > { %766 = vrot.lane.b32.xlu1 %v705_v13, %s2369_s16  ;;  %754 = vrot.lane.b32.xlu0 %v693_v17, %s2369_s16  ;;  %v546_v13 = vrot.slane %v2788_v32, 2 }
  0xa0   : > { %2177 = vmatmul.mubr.msk.f32.vlgmr.msra.gmra.mxu0 %vm1124_vm8, %v1081_v38  ;;  %v535_v25 = vsel %vm500_vm0, %v532_v50, %v534_v18  ;;  %v536_v38 = vrot.slane %v2819_v59, 2  ;;  %v706_v50 = vrot.slane %v2788_v32, 3 }
  0xa1   : > { %v571_v46 = vpop.permute.xlu1 %570  ;;  %v569_v47 = vpop.permute.xlu0 %568  ;;  %v547_v24 = vsel %vm500_vm0, %v544_v49, %v546_v13  ;;  %v549_v43 = vsel %vm500_vm0, %v546_v13, %v548_v29  ;;  %v2907_v13 = vld [vmem:[%s2471_s19 + $0x98] sm:$0xff] }
  0xa2   : > { %v1016_v36 = vsel %vm1013_vm5, %v983_v60, %v569_v47  ;;  %v1017_v11 = vsel %vm1013_vm5, %v984_v9, %v571_v46  ;;  %v537_v49 = vsel %vm500_vm0, %v534_v18, %v536_v38  ;;  %v695_v60 = vsel %vm660_vm2, %v692_v2, %v694_v44 }
  0xa3   : > { %924 = vrot.lane.b32.xlu1 %v863_v39, %s2370_s17  ;;  %912 = vrot.lane.b32.xlu0 %v851_v42, %s2370_s17 }
  0xa5   : > { %v731_v56 = vpop.permute.xlu1 %730  ;;  %v729_v57 = vpop.permute.xlu0 %728 }
  0xa6   : > { %v1049_v4 = vsel %vm1046_vm6, %v1016_v36, %v729_v57  ;;  %v1050_v3 = vsel %vm1046_vm6, %v1017_v11, %v731_v56  ;;  %v707_v57 = vsel %vm660_vm2, %v704_v1, %v706_v50  ;;  %v696_v36 = vrot.slane %v2819_v59, 3 }
  0xa7   : > { %448 = vrot.lane.b32.xlu1 %v387_v48, %s2368_s23  ;;  %436 = vrot.lane.b32.xlu0 %v375_v51, %s2368_s23  ;;  %v708_v51 = vrot.slane %v2816_v54, 3 }
  0xa9   : > { %v413_v6 = vpop.permute.xlu1 %412  ;;  %v889_v7 = vpop.permute.xlu0 %888  ;;  %v709_v1 = vsel %vm660_vm2, %v706_v50, %v708_v51 }
  0xaa   : > { %v1082_v8 = vsel %vm1079_vm7, %v1049_v4, %v889_v7  ;;  %v985_v48 = vsel %vm980_vm4, %v2517_v26, %v413_v6  ;;  %v697_v7 = vsel %vm660_vm2, %v694_v44, %v696_v36 }
  0xab   : > { %926 = vrot.lane.b32.xlu1 %v865_v62, %s2370_s17  ;;  %914 = vrot.lane.b32.xlu0 %v853_v0, %s2370_s17 }
  0xac   : > { %2179 = vmatprep.mubr.msk.f32.mxu0 %vm1124_vm8, %v1082_v8  ;;  %v866_v8 = vrot.slane %v2788_v32, 4 }
  0xad   : > { %v415_v17 = vpop.permute.xlu1 %414  ;;  %v891_v19 = vpop.permute.xlu0 %890 }
  0xae   : > { %v1083_v20 = vsel %vm1079_vm7, %v1050_v3, %v891_v19  ;;  %v986_v6 = vsel %vm980_vm4, %v2541_v40, %v415_v17  ;;  %v854_v40 = vrot.slane %v2791_v33, 4  ;;  %v867_v3 = vsel %vm820_vm3, %v864_v27, %v866_v8 }
  0xaf   : > { %450 = vrot.lane.b32.xlu1 %v389_v10, %s2368_s23  ;;  %438 = vrot.lane.b32.xlu0 %v377_v12, %s2368_s23  ;;  %v2904_v12 = vld [vmem:[%s2471_s19 + $0xc8] sm:$0xff] }
  0xb0   : > { %2180 = vmatmul.mubr.msk.f32.gmra.mxu0 %vm1124_vm8, %v1083_v20  ;;  %v855_v17 = vsel %vm820_vm3, %v852_v52, %v854_v40  ;;  %v390_v19 = vrot.slane %v2904_v12, 1  ;;  %v378_v20 = vrot.slane %v2907_v13, 1  ;;  %v868_v52 = vrot.slane %v2816_v54, 4 }
  0xb1   : > { %v575_v39 = vpop.permute.xlu1 %574  ;;  %v573_v42 = vpop.permute.xlu0 %572 }
  0xb2   : > { %v1018_v56 = vsel %vm1013_vm5, %v985_v48, %v573_v42  ;;  %v1019_v2 = vsel %vm1013_vm5, %v986_v6, %v575_v39  ;;  %v391_v39 = vsel %vm340_vm1, %v388_v34, %v390_v19  ;;  %v379_v27 = vsel %vm340_vm1, %v376_v5, %v378_v20 }
  0xb3   : > { %608 = vrot.lane.b32.xlu1 %v547_v24, %s2367_s22  ;;  %596 = vrot.lane.b32.xlu0 %v535_v25, %s2367_s22  ;;  %v856_v42 = vrot.slane %v2819_v59, 4  ;;  %v869_v5 = vsel %vm820_vm3, %v866_v8, %v868_v52 }
  0xb5   : > { %v735_v46 = vpop.permute.xlu1 %734  ;;  %v733_v47 = vpop.permute.xlu0 %732 }
  0xb6   : > { %v1051_v26 = vsel %vm1046_vm6, %v1018_v56, %v733_v47  ;;  %v1052_v9 = vsel %vm1046_vm6, %v1019_v2, %v735_v46  ;;  %v857_v47 = vsel %vm820_vm3, %v854_v40, %v856_v42 }
  0xb7   : > { %610 = vrot.lane.b32.xlu1 %v549_v43, %s2367_s22  ;;  %598 = vrot.lane.b32.xlu0 %v537_v49, %s2367_s22  ;;  %v2932_v43 = vld [vmem:[%s2471_s19 + $0xd0] sm:$0xff] }
  0xb8   : > { %v392_v34 = vrot.slane %v2932_v43, 1  ;;  %v552_v40 = vrot.slane %v2932_v43, 2 }
  0xb9   : > { %v417_v62 = vpop.permute.xlu1 %416  ;;  %v893_v0 = vpop.permute.xlu0 %892 }
  0xba   : > { %v1084_v4 = vsel %vm1079_vm7, %v1051_v26, %v893_v0  ;;  %v987_v44 = vsel %vm980_vm4, %v2550_v45, %v417_v62  ;;  %v393_v26 = vsel %vm340_vm1, %v390_v19, %v392_v34  ;;  %v381_v0 = vsel %vm340_vm1, %v378_v20, %v380_v28 }
  0xbb   : > { %768 = vrot.lane.b32.xlu1 %v707_v57, %s2369_s16  ;;  %756 = vrot.lane.b32.xlu0 %v695_v60, %s2369_s16  ;;  %v712_v20 = vrot.slane %v2932_v43, 3 }
  0xbc   : > { %2182 = vmatprep.mubr.msk.f32.mxu0 %vm1124_vm8, %v1084_v4  ;;  %v550_v4 = vrot.slane %v2904_v12, 2 }
  0xbd   : > { %v419_v10 = vpop.permute.xlu1 %418  ;;  %v895_v11 = vpop.permute.xlu0 %894 }
  0xbe   : > { %v1085_v18 = vsel %vm1079_vm7, %v1052_v9, %v895_v11  ;;  %v988_v60 = vsel %vm980_vm4, %v2571_v58, %v419_v10  ;;  %v538_v58 = vrot.slane %v2907_v13, 2  ;;  %v551_v28 = vsel %vm500_vm0, %v548_v29, %v550_v4 }
  0xbf   : > { %770 = vrot.lane.b32.xlu1 %v709_v1, %s2369_s16  ;;  %758 = vrot.lane.b32.xlu0 %v697_v7, %s2369_s16  ;;  %v553_v11 = vsel %vm500_vm0, %v550_v4, %v552_v40 }
  0xc0   : > { %2183 = vmatmul.mubr.msk.f32.gmra.mxu0 %vm1124_vm8, %v1085_v18  ;;  %v539_v8 = vsel %vm500_vm0, %v536_v38, %v538_v58  ;;  %v541_v29 = vsel %vm500_vm0, %v538_v58, %v540_v37  ;;  %v710_v18 = vrot.slane %v2904_v12, 3  ;;  %v698_v38 = vrot.slane %v2907_v13, 3 }
  0xc1   : > { %v579_v24 = vpop.permute.xlu1 %578  ;;  %v577_v25 = vpop.permute.xlu0 %576  ;;  %v872_v58 = vrot.slane %v2932_v43, 4 }
  0xc2   : > { %v1020_v46 = vsel %vm1013_vm5, %v987_v44, %v577_v25  ;;  %v1021_v62 = vsel %vm1013_vm5, %v988_v60, %v579_v24  ;;  %v711_v37 = vsel %vm660_vm2, %v708_v51, %v710_v18  ;;  %v699_v25 = vsel %vm660_vm2, %v696_v36, %v698_v38 }
  0xc3   : > { %928 = vrot.lane.b32.xlu1 %v867_v3, %s2370_s17  ;;  %916 = vrot.lane.b32.xlu0 %v855_v17, %s2370_s17  ;;  %v713_v51 = vsel %vm660_vm2, %v710_v18, %v712_v20  ;;  %v701_v44 = vsel %vm660_vm2, %v698_v38, %v700_v53 }
  0xc5   : > { %v739_v49 = vpop.permute.xlu1 %738  ;;  %v737_v50 = vpop.permute.xlu0 %736 }
  0xc6   : > { %v1053_v48 = vsel %vm1046_vm6, %v1020_v46, %v737_v50  ;;  %v1054_v6 = vsel %vm1046_vm6, %v1021_v62, %v739_v49  ;;  %v870_v46 = vrot.slane %v2904_v12, 4 }
  0xc7   : > { %452 = vrot.lane.b32.xlu1 %v391_v39, %s2368_s23  ;;  %440 = vrot.lane.b32.xlu0 %v379_v27, %s2368_s23 }
  0xc8   : > { %v871_v53 = vsel %vm820_vm3, %v868_v52, %v870_v46 }
  0xc9   : > { %v421_v56 = vpop.permute.xlu1 %420  ;;  %v897_v45 = vpop.permute.xlu0 %896 }
  0xca   : > { %v1086_v57 = vsel %vm1079_vm7, %v1053_v48, %v897_v45  ;;  %v989_v19 = vsel %vm980_vm4, %v2580_v63, %v421_v56  ;;  %v3014_v56 = vld [vmem:[%s2471_s19 + $0xd8] sm:$0xff] }
  0xcb   : > { %930 = vrot.lane.b32.xlu1 %v869_v5, %s2370_s17  ;;  %918 = vrot.lane.b32.xlu0 %v857_v47, %s2370_s17  ;;  %v394_v60 = vrot.slane %v3014_v56, 1 }
  0xcc   : > { %2185 = vmatprep.mubr.msk.f32.mxu0 %vm1124_vm8, %v1086_v57 }
  0xcd   : > { %v423_v1 = vpop.permute.xlu1 %422  ;;  %v899_v2 = vpop.permute.xlu0 %898  ;;  %v395_v52 = vsel %vm340_vm1, %v392_v34, %v394_v60 }
  0xce   : > { %v1087_v7 = vsel %vm1079_vm7, %v1054_v6, %v899_v2  ;;  %v990_v50 = vsel %vm980_vm4, %v2601_v15, %v423_v1  ;;  %v858_v15 = vrot.slane %v2907_v13, 4 }
  0xcf   : > { %454 = vrot.lane.b32.xlu1 %v393_v26, %s2368_s23  ;;  %442 = vrot.lane.b32.xlu0 %v381_v0, %s2368_s23  ;;  %v3028_v0 = vld [vmem:[%s2471_s19 + $0xe0] sm:$0xff] }
  0xd0   : > { %2186 = vmatmul.mubr.msk.f32.gmra.mxu0 %vm1124_vm8, %v1087_v7  ;;  %v859_v57 = vsel %vm820_vm3, %v856_v42, %v858_v15  ;;  %v861_v4 = vsel %vm820_vm3, %v858_v15, %v860_v16  ;;  %v396_v42 = vrot.slane %v3028_v0, 1  ;;  %v554_v7 = vrot.slane %v3014_v56, 2 }
  0xd1   : > { %v583_v9 = vpop.permute.xlu1 %582  ;;  %v581_v10 = vpop.permute.xlu0 %580  ;;  %v556_v16 = vrot.slane %v3028_v0, 2 }
  0xd2   : > { %v1022_v24 = vsel %vm1013_vm5, %v989_v19, %v581_v10  ;;  %v1023_v36 = vsel %vm1013_vm5, %v990_v50, %v583_v9  ;;  %v397_v34 = vsel %vm340_vm1, %v394_v60, %v396_v42  ;;  %v716_v19 = vrot.slane %v3028_v0, 3 }
  0xd3   : > { %612 = vrot.lane.b32.xlu1 %v551_v28, %s2367_s22  ;;  %600 = vrot.lane.b32.xlu0 %v539_v8, %s2367_s22  ;;  %v873_v8 = vsel %vm820_vm3, %v870_v46, %v872_v58  ;;  %v557_v18 = vsel %vm500_vm0, %v554_v7, %v556_v16 }
  0xd5   : > { %v743_v3 = vpop.permute.xlu1 %742  ;;  %v741_v17 = vpop.permute.xlu0 %740 }
  0xd6   : > { %v1055_v39 = vsel %vm1046_vm6, %v1022_v24, %v741_v17  ;;  %v1056_v5 = vsel %vm1046_vm6, %v1023_v36, %v743_v3  ;;  %v555_v3 = vsel %vm500_vm0, %v552_v40, %v554_v7  ;;  %v714_v17 = vrot.slane %v3014_v56, 3  ;;  %v3078_v36 = vld [vmem:[%s2471_s19 + $0xf0] sm:$0xff] }
  0xd7   : > { %614 = vrot.lane.b32.xlu1 %v553_v11, %s2367_s22  ;;  %602 = vrot.lane.b32.xlu0 %v541_v29, %s2367_s22  ;;  %v400_v15 = vrot.slane %v3078_v36, 1  ;;  %v720_v7 = vrot.slane %v3078_v36, 3 }
  0xd8   : > { %v717_v40 = vsel %vm660_vm2, %v714_v17, %v716_v19 }
  0xd9   : > { %v425_v63 = vpop.permute.xlu1 %424  ;;  %v901_v27 = vpop.permute.xlu0 %900 }
  0xda   : > { %v1088_v49 = vsel %vm1079_vm7, %v1055_v39, %v901_v27  ;;  %v991_v2 = vsel %vm980_vm4, %v2610_v21, %v425_v63  ;;  %v715_v63 = vsel %vm660_vm2, %v712_v20, %v714_v17  ;;  %v876_v20 = vrot.slane %v3028_v0, 4 }
  0xdb   : > { %772 = vrot.lane.b32.xlu1 %v711_v37, %s2369_s16  ;;  %760 = vrot.lane.b32.xlu0 %v699_v25, %s2369_s16  ;;  %v3065_v25 = vld [vmem:[%s2471_s19 + $0xe8] sm:$0xff] }
  0xdc   : > { %2188 = vmatprep.mubr.msk.f32.mxu0 %vm1124_vm8, %v1088_v49  ;;  %v398_v27 = vrot.slane %v3065_v25, 1  ;;  %v874_v49 = vrot.slane %v3014_v56, 4 }
  0xdd   : > { %v427_v47 = vpop.permute.xlu1 %426  ;;  %v903_v48 = vpop.permute.xlu0 %902 }
  0xde   : > { %v1089_v45 = vsel %vm1079_vm7, %v1056_v5, %v903_v48  ;;  %v992_v29 = vsel %vm980_vm4, %v2631_v35, %v427_v47  ;;  %v875_v46 = vsel %vm820_vm3, %v872_v58, %v874_v49  ;;  %v401_v60 = vsel %vm340_vm1, %v398_v27, %v400_v15 }
  0xdf   : > { %774 = vrot.lane.b32.xlu1 %v713_v51, %s2369_s16  ;;  %762 = vrot.lane.b32.xlu0 %v701_v44, %s2369_s16  ;;  %v399_v44 = vsel %vm340_vm1, %v396_v42, %v398_v27 }
  0xe0   : > { %2189 = vmatmul.mubr.msk.f32.gmra.mxu0 %vm1124_vm8, %v1089_v45  ;;  %v558_v45 = vrot.slane %v3065_v25, 2 }
  0xe1   : > { %v587_v26 = vpop.permute.xlu1 %586  ;;  %v585_v62 = vpop.permute.xlu0 %584 }
  0xe2   : > { %v1024_v28 = vsel %vm1013_vm5, %v991_v2, %v585_v62  ;;  %v1025_v38 = vsel %vm1013_vm5, %v992_v29, %v587_v26  ;;  %v877_v26 = vsel %vm820_vm3, %v874_v49, %v876_v20  ;;  %v718_v2 = vrot.slane %v3065_v25, 3 }
  0xe3   : > { %932 = vrot.lane.b32.xlu1 %v871_v53, %s2370_s17  ;;  %920 = vrot.lane.b32.xlu0 %v859_v57, %s2370_s17  ;;  %v560_v53 = vrot.slane %v3078_v36, 2 }
  0xe5   : > { %v747_v6 = vpop.permute.xlu1 %746  ;;  %v745_v1 = vpop.permute.xlu0 %744  ;;  %v561_v58 = vsel %vm500_vm0, %v558_v45, %v560_v53 }
  0xe6   : > { %v1057_v9 = vsel %vm1046_vm6, %v1024_v28, %v745_v1  ;;  %v1058_v35 = vsel %vm1046_vm6, %v1025_v38, %v747_v6  ;;  %v559_v1 = vsel %vm500_vm0, %v556_v16, %v558_v45  ;;  %v719_v16 = vsel %vm660_vm2, %v716_v19, %v718_v2 }
  0xe7   : > { %922 = vrot.lane.b32.xlu1 %v861_v4, %s2370_s17  ;;  %456 = vrot.lane.b32.xlu0 %v395_v52, %s2368_s23 }
  0xe9   : > { %v429_v10 = vpop.permute.xlu1 %428  ;;  %v905_v11 = vpop.permute.xlu0 %904 }
  0xea   : > { %v1090_v21 = vsel %vm1079_vm7, %v1057_v9, %v905_v11  ;;  %v993_v48 = vsel %vm980_vm4, %v2640_v41, %v429_v10  ;;  %v721_v9 = vsel %vm660_vm2, %v718_v2, %v720_v7  ;;  %v878_v10 = vrot.slane %v3065_v25, 4 }
  0xeb   : > { %458 = vrot.lane.b32.xlu1 %v397_v34, %s2368_s23  ;;  %934 = vrot.lane.b32.xlu0 %v873_v8, %s2370_s17  ;;  %v880_v11 = vrot.slane %v3078_v36, 4 }
  0xec   : > { %2191 = vmatprep.mubr.msk.f32.mxu0 %vm1124_vm8, %v1090_v21 }
  0xed   : > { %v431_v24 = vpop.permute.xlu1 %430  ;;  %v907_v37 = vpop.permute.xlu0 %906  ;;  %v881_v38 = vsel %vm820_vm3, %v878_v10, %v880_v11 }
  0xee   : > { %v1091_v39 = vsel %vm1079_vm7, %v1058_v35, %v907_v37  ;;  %v994_v42 = vsel %vm980_vm4, %v2661_v55, %v431_v24 }
  0xef   : > { %618 = vrot.lane.b32.xlu1 %v557_v18, %s2367_s22  ;;  %616 = vrot.lane.b32.xlu0 %v555_v3, %s2367_s22  ;;  %v3117_v18 = vld [vmem:[%s2471_s19 + $0xf8] sm:$0xff]  ;;  %v879_v3 = vsel %vm820_vm3, %v876_v20, %v878_v10  ;;  %s2125_s19 = sshll.u32 %s2436_s28, 4  ;;  %s2309_s28 = sshll.u32 %s2374_s15, 4  ;;  %s2310_s28 = int_to_ptr.vmem [resolvable:$false] %s2309_s28 }
  0xf0   : > { %2192 = vmatmul.mubr.msk.f32.gmra.mxu0 %vm1124_vm8, %v1091_v39  ;;  %v402_v17 = vrot.slane %v3117_v18, 1  ;;  %v562_v37 = vrot.slane %v3117_v18, 2  ;;  %v722_v27 = vrot.slane %v3117_v18, 3  ;;  %s2020_s9 = scalar_lea.hbm %s3662_s7, %s2125_s19 }
  0xf1   : > { %v591_v50 = vpop.permute.xlu1 %590  ;;  %v589_v51 = vpop.permute.xlu0 %588 }
  0xf2   : > { %v1026_v57 = vsel %vm1013_vm5, %v993_v48, %v589_v51  ;;  %v1027_v6 = vsel %vm1013_vm5, %v994_v42, %v591_v50  ;;  %v403_v24 = vsel %vm340_vm1, %v400_v15, %v402_v17  ;;  %v723_v51 = vsel %vm660_vm2, %v720_v7, %v722_v27 }
  0xf3   : > { %778 = vrot.lane.b32.xlu1 %v717_v40, %s2369_s16  ;;  %776 = vrot.lane.b32.xlu0 %v715_v63, %s2369_s16  ;;  %v563_v63 = vsel %vm500_vm0, %v560_v53, %v562_v37 }
  0xf5   : > { %v751_v5 = vpop.permute.xlu1 %750  ;;  %v749_v47 = vpop.permute.xlu0 %748 }
  0xf6   : > { %v1059_v62 = vsel %vm1046_vm6, %v1026_v57, %v749_v47  ;;  %v1060_v28 = vsel %vm1046_vm6, %v1027_v6, %v751_v5 }
  0xf7   : > { %460 = vrot.lane.b32.xlu1 %v399_v44, %s2368_s23  ;;  %936 = vrot.lane.b32.xlu0 %v875_v46, %s2370_s17  ;;  %v882_v44 = vrot.slane %v3117_v18, 4 }
  0xf9   : > { %v433_v4 = vpop.permute.xlu1 %432  ;;  %v909_v52 = vpop.permute.xlu0 %908  ;;  %v883_v45 = vsel %vm820_vm3, %v880_v11, %v882_v44 }
  0xfa   : > { %v1092_v41 = vsel %vm1079_vm7, %v1059_v62, %v909_v52  ;;  %v995_v20 = vsel %vm980_vm4, %v2670_v61, %v433_v4 }
  0xfb   : > { %462 = vrot.lane.b32.xlu1 %v401_v60, %s2368_s23  ;;  %938 = vrot.lane.b32.xlu0 %v877_v26, %s2370_s17 }
  0xfc   : > { %2194 = vmatprep.mubr.msk.f32.mxu0 %vm1124_vm8, %v1092_v41 }
  0xfd   : > { %v911_v55 = vpop.permute.xlu1 %910  ;;  %v445_v34 = vpop.permute.xlu0 %444 }
  0xfe   : > { %v1093_v8 = vsel %vm1079_vm7, %v1060_v28, %v911_v55  ;;  %v1001_v5 = vsel %vm980_vm4, %v2700_v22, %v445_v34 }
  0xff   : > { %622 = vrot.lane.b32.xlu1 %v561_v58, %s2367_s22  ;;  %620 = vrot.lane.b32.xlu0 %v559_v1, %s2367_s22 }
 0x100   : > { %2195 = vmatmul.mubr.msk.f32.gmra.mxu0 %vm1124_vm8, %v1093_v8 }
 0x101   : > { %v447_v21 = vpop.permute.xlu1 %446  ;;  %v435_v29 = vpop.permute.xlu0 %434 }
 0x102   : > { %v1002_v52 = vsel %vm980_vm4, %v2703_v23, %v447_v21  ;;  %v996_v41 = vsel %vm980_vm4, %v2691_v14, %v435_v29 }
 0x103   : > { %782 = vrot.lane.b32.xlu1 %v721_v9, %s2369_s16  ;;  %780 = vrot.lane.b32.xlu0 %v719_v16, %s2369_s16 }
 0x105   : > { %v605_v35 = vpop.permute.xlu1 %604  ;;  %v593_v19 = vpop.permute.xlu0 %592 }
 0x106   : > { %v1034_v47 = vsel %vm1013_vm5, %v1001_v5, %v605_v35  ;;  %v1028_v48 = vsel %vm1013_vm5, %v995_v20, %v593_v19 }
 0x107   : > { %942 = vrot.lane.b32.xlu1 %v881_v38, %s2370_s17  ;;  %940 = vrot.lane.b32.xlu0 %v879_v3, %s2370_s17 }
 0x109   : > { %v607_v39 = vpop.permute.xlu1 %606  ;;  %v595_v40 = vpop.permute.xlu0 %594 }
 0x10a   : > { %v1035_v42 = vsel %vm1013_vm5, %v1002_v52, %v607_v39  ;;  %v1029_v58 = vsel %vm1013_vm5, %v996_v41, %v595_v40 }
 0x10b   : > { %464 = vrot.lane.b32.xlu0 %v403_v24, %s2368_s23  ;;  %466 = vrot.lane.b32.xlu1 %v402_v17, %s2368_s23 }
 0x10d   : > { %v765_v49 = vpop.permute.xlu1 %764  ;;  %v753_v50 = vpop.permute.xlu0 %752 }
 0x10e   : > { %v1067_v53 = vsel %vm1046_vm6, %v1034_v47, %v765_v49  ;;  %v1061_v57 = vsel %vm1046_vm6, %v1028_v48, %v753_v50 }
 0x10f   : > { %624 = vrot.lane.b32.xlu0 %v563_v63, %s2367_s22  ;;  %626 = vrot.lane.b32.xlu1 %v562_v37, %s2367_s22  ;;  %s2373_s22 = smov 96  }
 0x111   : > { %v767_v46 = vpop.permute.xlu1 %766  ;;  %v755_v15 = vpop.permute.xlu0 %754 }
 0x112   : > { %v1068_v6 = vsel %vm1046_vm6, %v1035_v42, %v767_v46  ;;  %v1062_v1 = vsel %vm1046_vm6, %v1029_v58, %v755_v15 }
 0x113   : > { %784 = vrot.lane.b32.xlu0 %v723_v51, %s2369_s16  ;;  %786 = vrot.lane.b32.xlu1 %v722_v27, %s2369_s16  ;;  %s2311_s16 = scalar_lea.vmem %s2310_s28, 32 }
 0x115   : > { %v925_v60 = vpop.permute.xlu1 %924  ;;  %v913_v26 = vpop.permute.xlu0 %912 }
 0x116   : > { %v1094_v61 = vsel %vm1079_vm7, %v1061_v57, %v913_v26  ;;  %v1100_v22 = vsel %vm1079_vm7, %v1067_v53, %v925_v60 }
 0x117   : > { %944 = vrot.lane.b32.xlu0 %v883_v45, %s2370_s17  ;;  %2197 = vmatprep.mubr.msk.f32.mxu0 %vm1124_vm8, %v1094_v61 }
 0x118   : > { %2206 = vmatprep.mubr.msk.f32.mxu1 %vm1124_vm8, %v1100_v22  ;;  %946 = vrot.lane.b32.xlu1 %v882_v44, %s2370_s17 }
 0x119   : > { %v449_v62 = vpop.permute.xlu1 %448  ;;  %v437_v4 = vpop.permute.xlu0 %436 }
 0x11a   : > { %v1003_v38 = vsel %vm980_vm4, %v2713_v30, %v449_v62  ;;  %v997_v3 = vsel %vm980_vm4, %v2716_v31, %v437_v4 }
 0x11d   : > { %v927_v2 = vpop.permute.xlu1 %926  ;;  %v915_v7 = vpop.permute.xlu0 %914 }
 0x11e   : > { %v1101_v28 = vsel %vm1079_vm7, %v1068_v6, %v927_v2  ;;  %v1095_v55 = vsel %vm1079_vm7, %v1062_v1, %v915_v7 }
 0x11f   : > { %2198 = vmatmul.mubr.msk.f32.gmra.mxu0 %vm1124_vm8, %v1095_v55  ;;  %2207 = vmatmul.mubr.msk.f32.vlgmr.msra.gmra.mxu1 %vm1124_vm8, %v1101_v28 }
 0x121   : > { %v451_v23 = vpop.permute.xlu1 %450  ;;  %v439_v14 = vpop.permute.xlu0 %438 }
 0x122   : > { %v1004_v27 = vsel %vm980_vm4, %v2788_v32, %v451_v23  ;;  %v998_v49 = vsel %vm980_vm4, %v2791_v33, %v439_v14 }
 0x125   : > { %v609_v34 = vpop.permute.xlu1 %608  ;;  %v597_v8 = vpop.permute.xlu0 %596 }
 0x126   : > { %v1036_v17 = vsel %vm1013_vm5, %v1003_v38, %v609_v34  ;;  %v1030_v35 = vsel %vm1013_vm5, %v997_v3, %v597_v8 }
 0x129   : > { %v611_v9 = vpop.permute.xlu1 %610  ;;  %v599_v16 = vpop.permute.xlu0 %598 }
 0x12a   : > { %v1037_v50 = vsel %vm1013_vm5, %v1004_v27, %v611_v9  ;;  %v1031_v51 = vsel %vm1013_vm5, %v998_v49, %v599_v16 }
 0x12d   : > { %v769_v10 = vpop.permute.xlu1 %768  ;;  %v757_v11 = vpop.permute.xlu0 %756 }
 0x12e   : > { %v1069_v19 = vsel %vm1046_vm6, %v1036_v17, %v769_v10  ;;  %v1063_v24 = vsel %vm1046_vm6, %v1030_v35, %v757_v11  ;;  %v3215_v11 = vld [vmem:[%s3657_s2] ss:$0 sm:$0xff] }
 0x131   : > { %v771_v21 = vpop.permute.xlu1 %770  ;;  %v759_v29 = vpop.permute.xlu0 %758 }
 0x132   : > { %v1070_v44 = vsel %vm1046_vm6, %v1037_v50, %v771_v21  ;;  %v1064_v46 = vsel %vm1046_vm6, %v1031_v51, %v759_v29 }
 0x135   : > { %v929_v37 = vpop.permute.xlu1 %928  ;;  %v917_v39 = vpop.permute.xlu0 %916 }
 0x136   : > { %v1102_v40 = vsel %vm1079_vm7, %v1069_v19, %v929_v37  ;;  %v1096_v63 = vsel %vm1079_vm7, %v1063_v24, %v917_v39 }
 0x137   : > { %2200 = vmatprep.mubr.msk.f32.mxu0 %vm1124_vm8, %v1096_v63  ;;  %2209 = vmatprep.mubr.msk.f32.mxu1 %vm1124_vm8, %v1102_v40 }
 0x139   : > { %v453_v30 = vpop.permute.xlu1 %452  ;;  %v441_v31 = vpop.permute.xlu0 %440 }
 0x13a   : > { %v1005_v62 = vsel %vm980_vm4, %v2816_v54, %v453_v30  ;;  %v999_v4 = vsel %vm980_vm4, %v2819_v59, %v441_v31 }
 0x13d   : > { %v931_v15 = vpop.permute.xlu1 %930  ;;  %v919_v20 = vpop.permute.xlu0 %918 }
 0x13e   : > { %v1103_v5 = vsel %vm1079_vm7, %v1070_v44, %v931_v15  ;;  %v1097_v47 = vsel %vm1079_vm7, %v1064_v46, %v919_v20 }
 0x13f   : > { %2201 = vmatmul.mubr.msk.f32.gmra.mxu0 %vm1124_vm8, %v1097_v47  ;;  %2210 = vmatmul.mubr.msk.f32.gmra.mxu1 %vm1124_vm8, %v1103_v5 }
 0x141   : > { %v455_v32 = vpop.permute.xlu1 %454  ;;  %v443_v33 = vpop.permute.xlu0 %442 }
 0x142   : > { %v1000_v54 = vsel %vm980_vm4, %v2907_v13, %v443_v33  ;;  %v1006_v34 = vsel %vm980_vm4, %v2904_v12, %v455_v32 }
 0x145   : > { %v613_v48 = vpop.permute.xlu1 %612  ;;  %v601_v45 = vpop.permute.xlu0 %600 }
 0x146   : > { %v1038_v52 = vsel %vm1013_vm5, %v1005_v62, %v613_v48  ;;  %v1032_v41 = vsel %vm1013_vm5, %v999_v4, %v601_v45 }
 0x149   : > { %v615_v53 = vpop.permute.xlu1 %614  ;;  %v603_v57 = vpop.permute.xlu0 %602 }
 0x14a   : > { %v1033_v59 = vsel %vm1013_vm5, %v1000_v54, %v603_v57  ;;  %v1039_v8 = vsel %vm1013_vm5, %v1006_v34, %v615_v53 }
 0x14d   : > { %v773_v60 = vpop.permute.xlu1 %772  ;;  %v761_v26 = vpop.permute.xlu0 %760 }
 0x14e   : > { %v1071_v42 = vsel %vm1046_vm6, %v1038_v52, %v773_v60  ;;  %v1065_v58 = vsel %vm1046_vm6, %v1032_v41, %v761_v26 }
 0x151   : > { %v775_v61 = vpop.permute.xlu1 %774  ;;  %v763_v22 = vpop.permute.xlu0 %762 }
 0x152   : > { %v1066_v28 = vsel %vm1046_vm6, %v1033_v59, %v763_v22  ;;  %v1072_v13 = vsel %vm1046_vm6, %v1039_v8, %v775_v61 }
 0x155   : > { %v933_v6 = vpop.permute.xlu1 %932  ;;  %v921_v1 = vpop.permute.xlu0 %920 }
 0x156   : > { %v1104_v2 = vsel %vm1079_vm7, %v1071_v42, %v933_v6  ;;  %v1098_v7 = vsel %vm1079_vm7, %v1065_v58, %v921_v1 }
 0x157   : > { %2203 = vmatprep.mubr.msk.f32.mxu0 %vm1124_vm8, %v1098_v7  ;;  %2212 = vmatprep.mubr.msk.f32.mxu1 %vm1124_vm8, %v1104_v2 }
 0x159   : > { %v923_v55 = vpop.permute.xlu1 %922  ;;  %v457_v23 = vpop.permute.xlu0 %456 }
 0x15a   : > { %v1099_v14 = vsel %vm1079_vm7, %v1066_v28, %v923_v55  ;;  %v1007_v24 = vsel %vm980_vm4, %v2932_v43, %v457_v23 }
 0x15b   : > { %2204 = vmatmul.mubr.msk.f32.gmra.mxu0 %vm1124_vm8, %v1099_v14 }
 0x15d   : > { %v459_v9 = vpop.permute.xlu1 %458  ;;  %v935_v16 = vpop.permute.xlu0 %934 }
 0x15e   : > { %v1105_v10 = vsel %vm1079_vm7, %v1072_v13, %v935_v16  ;;  %v1008_v31 = vsel %vm980_vm4, %v3014_v56, %v459_v9 }
 0x15f   : > { %2213 = vmatmul.mubr.msk.f32.gmra.mxu1 %vm1124_vm8, %v1105_v10 }
 0x160   : > { %v2178_v21 = vpop.f32.mrf.mxu0 }
 0x161   : > { %v1293_v12 = vadd.f32 %v2178_v21, %v3215_v11  ;;  %v619_v29 = vpop.permute.xlu1 %618  ;;  %v617_v38 = vpop.permute.xlu0 %616 }
 0x162   : > { %v1287_v3 = vpop.f32.mrf.mxu0  ;;  %v1040_v37 = vsel %vm1013_vm5, %v1007_v24, %v617_v38  ;;  %v1041_v27 = vsel %vm1013_vm5, %v1008_v31, %v619_v29 }
 0x163   : > { %1447 = vst.msk [vmem:[#allocation2 + $0x8] sm:$0xff] %vm1079_vm7, %v1293_v12  ;;  %v1288_v17 = vadd.f32 %v3215_v11, %v1287_v3 }
 0x165   : > { %1446 = vst.msk [vmem:[#allocation2] sm:$0xff] %vm1079_vm7, %v1288_v17  ;;  %v779_v35 = vpop.permute.xlu1 %778  ;;  %v777_v19 = vpop.permute.xlu0 %776 }
 0x166   : > { %v1073_v39 = vsel %vm1046_vm6, %v1040_v37, %v777_v19  ;;  %v1074_v49 = vsel %vm1046_vm6, %v1041_v27, %v779_v35 }
 0x169   : > { %v461_v40 = vpop.permute.xlu1 %460  ;;  %v937_v63 = vpop.permute.xlu0 %936 }
 0x16a   : > { %v1106_v30 = vsel %vm1079_vm7, %v1073_v39, %v937_v63  ;;  %v1009_v33 = vsel %vm980_vm4, %v3028_v0, %v461_v40 }
 0x16b   : > { %2215 = vmatprep.mubr.msk.f32.mxu1 %vm1124_vm8, %v1106_v30 }
 0x16d   : > { %v463_v50 = vpop.permute.xlu1 %462  ;;  %v939_v51 = vpop.permute.xlu0 %938 }
 0x16e   : > { %v1107_v43 = vsel %vm1079_vm7, %v1074_v49, %v939_v51  ;;  %v1010_v48 = vsel %vm980_vm4, %v3065_v25, %v463_v50 }
 0x16f   : > { %2216 = vmatmul.mubr.msk.f32.gmra.mxu1 %vm1124_vm8, %v1107_v43 }
 0x170   : > { %v2181_v44 = vpop.f32.mrf.mxu0 }
 0x171   : > { %v1303_v46 = vadd.f32 %v2181_v44, %v3215_v11  ;;  %v623_v15 = vpop.permute.xlu1 %622  ;;  %v621_v20 = vpop.permute.xlu0 %620 }
 0x172   : > { %v1297_v5 = vpop.f32.mrf.mxu0  ;;  %v1043_v45 = vsel %vm1013_vm5, %v1010_v48, %v623_v15  ;;  %v1042_v53 = vsel %vm1013_vm5, %v1009_v33, %v621_v20 }
 0x173   : > { %1449 = vst.msk [vmem:[#allocation2 + $0x18] sm:$0xff] %vm1079_vm7, %v1303_v46  ;;  %v1298_v56 = vadd.f32 %v3215_v11, %v1297_v5 }
 0x175   : > { %1448 = vst.msk [vmem:[#allocation2 + $0x10] sm:$0xff] %vm1079_vm7, %v1298_v56  ;;  %v783_v47 = vpop.permute.xlu1 %782  ;;  %v781_v32 = vpop.permute.xlu0 %780 }
 0x176   : > { %v1076_v57 = vsel %vm1046_vm6, %v1043_v45, %v783_v47  ;;  %v1075_v60 = vsel %vm1046_vm6, %v1042_v53, %v781_v32  ;;  %v2371_v53 = vmov 0.0  }
 0x177   : > { %1744 = vmatprep.subr.mxu1 %v2371_v53  ;;  %1922 = vmatprep.subr.mxu0 %v2371_v53 }
 0x179   : > { %v943_v26 = vpop.permute.xlu1 %942  ;;  %v941_v61 = vpop.permute.xlu0 %940 }
 0x17a   : > { %v1109_v22 = vsel %vm1079_vm7, %v1076_v57, %v943_v26  ;;  %v1108_v62 = vsel %vm1079_vm7, %v1075_v60, %v941_v61  ;;  %v1720_v60 = vld [vmem:[%s3658_s3 + $0x78] sm:$0xff]  ;;  %v1719_v26 = vld [vmem:[%s3658_s3 + $0x70] sm:$0xff]  ;;  %v1718_v61 = vld [vmem:[%s3658_s3 + $0x68] sm:$0xff] }
 0x17b   : > { %2218 = vmatprep.mubr.msk.f32.mxu1 %vm1124_vm8, %v1108_v62  ;;  %1745 = vmatpush1.msra.mxu1 %v1720_v60  ;;  %v1716_v62 = vld [vmem:[%s3658_s3 + $0x58] sm:$0xff] }
 0x17c   : > { %2219 = vmatmul.mubr.msk.f32.gmra.mxu1 %vm1124_vm8, %v1109_v22  ;;  %1746 = vmatprep.subr.mxu1 %v2371_v53  ;;  %v1717_v22 = vld [vmem:[%s3658_s3 + $0x60] sm:$0xff] }
 0x17d   : > { %v465_v0 = vpop.permute.xlu0 %464  ;;  %v467_v25 = vpop.permute.xlu1 %466  ;;  %1747 = vmatpush1.msra.mxu1 %v1719_v26 }
 0x17e   : > { %v1011_v52 = vsel %vm980_vm4, %v3078_v36, %v465_v0  ;;  %v1012_v6 = vsel %vm980_vm4, %v3117_v18, %v467_v25  ;;  %1748 = vmatprep.subr.mxu1 %v2371_v53  ;;  %v1715_v0 = vld [vmem:[%s3658_s3 + $0x50] sm:$0xff]  ;;  %v1714_v25 = vld [vmem:[%s3658_s3 + $0x48] sm:$0xff] }
 0x17f   : > { %1749 = vmatpush1.msra.mxu1 %v1718_v61 }
 0x180   : > { %v2184_v4 = vpop.f32.mrf.mxu0  ;;  %1750 = vmatprep.subr.mxu1 %v2371_v53 }
 0x181   : > { %v1313_v41 = vadd.f32 %v2184_v4, %v3215_v11  ;;  %v625_v42 = vpop.permute.xlu0 %624  ;;  %v627_v58 = vpop.permute.xlu1 %626  ;;  %1751 = vmatpush1.msra.mxu1 %v1717_v22  ;;  %v1713_v4 = vld [vmem:[%s3658_s3 + $0x40] sm:$0xff] }
 0x182   : > { %v1307_v1 = vpop.f32.mrf.mxu0  ;;  %v1044_v7 = vsel %vm1013_vm5, %v1011_v52, %v625_v42  ;;  %v1045_v54 = vsel %vm1013_vm5, %v1012_v6, %v627_v58  ;;  %1752 = vmatprep.subr.mxu1 %v2371_v53  ;;  %v1712_v52 = vld [vmem:[%s3658_s3 + $0x38] sm:$0xff]  ;;  %v1710_v6 = vld [vmem:[%s3658_s3 + $0x28] sm:$0xff] }
 0x183   : > { %1451 = vst.msk [vmem:[#allocation2 + $0x28] sm:$0xff] %vm1079_vm7, %v1313_v41  ;;  %v1308_v2 = vadd.f32 %v3215_v11, %v1307_v1  ;;  %1753 = vmatpush1.msra.mxu1 %v1716_v62  ;;  %v1711_v41 = vld [vmem:[%s3658_s3 + $0x30] sm:$0xff] }
 0x184   : > { %1754 = vmatprep.subr.mxu1 %v2371_v53 }
 0x185   : > { %1450 = vst.msk [vmem:[#allocation2 + $0x20] sm:$0xff] %vm1079_vm7, %v1308_v2  ;;  %v785_v59 = vpop.permute.xlu0 %784  ;;  %v787_v36 = vpop.permute.xlu1 %786  ;;  %1755 = vmatpush1.msra.mxu1 %v1715_v0 }
 0x186   : > { %v1077_v28 = vsel %vm1046_vm6, %v1044_v7, %v785_v59  ;;  %v1078_v55 = vsel %vm1046_vm6, %v1045_v54, %v787_v36  ;;  %1756 = vmatprep.subr.mxu1 %v2371_v53  ;;  %v1709_v59 = vld [vmem:[%s3658_s3 + $0x20] sm:$0xff] }
 0x187   : > { %1757 = vmatpush1.msra.mxu1 %v1714_v25 }
 0x188   : > { %1758 = vmatprep.subr.mxu1 %v2371_v53 }
 0x189   : > { %v945_v23 = vpop.permute.xlu0 %944  ;;  %1759 = vmatpush1.msra.mxu1 %v1713_v4 }
 0x18a   : > { %v1110_v18 = vsel %vm1079_vm7, %v1077_v28, %v945_v23  ;;  %v947_v14 = vpop.permute.xlu1 %946  ;;  %1760 = vmatprep.subr.mxu1 %v2371_v53  ;;  %v1707_v23 = vld [vmem:[%s3658_s3 + $0x10] sm:$0xff] }
 0x18b   : > { %v1111_v34 = vsel %vm1079_vm7, %v1078_v55, %v947_v14  ;;  %2221 = vmatprep.mubr.msk.f32.mxu1 %vm1124_vm8, %v1110_v18  ;;  %1761 = vmatpush1.msra.mxu1 %v1712_v52  ;;  %v1708_v55 = vld [vmem:[%s3658_s3 + $0x18] sm:$0xff]  ;;  %v1706_v18 = vld [vmem:[%s3658_s3 + $0x8] sm:$0xff]  ;;  %v1705_v14 = vld [vmem:[%s3658_s3] sm:$0xff] }
 0x18c   : > { %2222 = vmatmul.mubr.msk.f32.gmra.mxu1 %vm1124_vm8, %v1111_v34  ;;  %v1479_v29 = vld [vmem:[#allocation2] ss:$5 sm:$0xff]  ;;  %v1493_v38 = vld [vmem:[#allocation2 + $0x1] ss:$5 sm:$0xff]  ;;  %1762 = vmatprep.subr.mxu1 %v2371_v53 }
 0x18d   : > { %v1506_v17 = vmax.f32 %v1479_v29, %v1493_v38  ;;  %v1514_v35 = vld [vmem:[#allocation2 + $0x2] ss:$5 sm:$0xff]  ;;  %v1535_v39 = vld [vmem:[#allocation2 + $0x3] ss:$5 sm:$0xff]  ;;  %1763 = vmatpush1.msra.mxu1 %v1711_v41 }
 0x18e   : > { %v1556_v50 = vld [vmem:[#allocation2 + $0x4] ss:$5 sm:$0xff]  ;;  %1764 = vmatprep.subr.mxu1 %v2371_v53 }
 0x18f   : > { %v1527_v19 = vmax.f32 %v1506_v17, %v1514_v35  ;;  %1765 = vmatpush1.msra.mxu1 %v1710_v6  ;;  %v1722_v38 = vld [vmem:[%s3658_s3 + $0x88] sm:$0xff]  ;;  %v1721_v17 = vld [vmem:[%s3658_s3 + $0x80] sm:$0xff] }
 0x190   : > { %v2187_v8 = vpop.f32.mrf.mxu0  ;;  %1766 = vmatprep.subr.mxu1 %v2371_v53 }
 0x191   : > { %v1323_v13 = vadd.f32 %v2187_v8, %v3215_v11  ;;  %v1548_v63 = vmax.f32 %v1527_v19, %v1535_v39  ;;  %1767 = vmatpush1.msra.mxu1 %v1709_v59 }
 0x192   : > { %v1317_v9 = vpop.f32.mrf.mxu0  ;;  %1768 = vmatprep.subr.mxu1 %v2371_v53 }
 0x193   : > { %1453 = vst.msk [vmem:[#allocation2 + $0x38] sm:$0xff] %vm1079_vm7, %v1323_v13  ;;  %v1318_v16 = vadd.f32 %v3215_v11, %v1317_v9  ;;  %v3275_v44 = vmax.f32 %v1548_v63, %v1556_v50  ;;  %1769 = vmatpush1.msra.mxu1 %v1708_v55 }
 0x194   : > { %1770 = vmatprep.subr.mxu1 %v2371_v53 }
 0x195   : > { %1452 = vst.msk [vmem:[#allocation2 + $0x30] sm:$0xff] %vm1079_vm7, %v1318_v16  ;;  %v1672_v56 = vrot.slane %v3275_v44, 4  ;;  %1771 = vmatpush1.msra.mxu1 %v1707_v23  ;;  %v1724_v16 = vld [vmem:[%s3658_s3 + $0x98] sm:$0xff] }
 0x196   : > { %1772 = vmatprep.subr.mxu1 %v2371_v53 }
 0x197   : > { %1773 = vmatpush1.msra.mxu1 %v1706_v18 }
 0x198   : > { %1774 = vmatprep.subr.mxu1 %v2371_v53 }
 0x199   : > { %1775 = vmatpush1.msra.mxu1 %v1705_v14 }
 0x19a   : > { %1800 = vmatprep.subr.mxu1 %v2371_v53 }
 0x19b   : > { %1801 = vmatpush2.msra.mxu1 %v1724_v16 }
 0x19c   : > { %1802 = vmatprep.subr.mxu1 %v2371_v53 }
 0x1a0   : > { %v2190_v10 = vpop.f32.mrf.mxu0 }
 0x1a1   : > { %v1333_v21 = vadd.f32 %v2190_v10, %v3215_v11 }
 0x1a2   : > { %v1327_v12 = vpop.f32.mrf.mxu0 }
 0x1a3   : > { %1455 = vst.msk [vmem:[#allocation2 + $0x48] sm:$0xff] %vm1079_vm7, %v1333_v21  ;;  %v1328_v3 = vadd.f32 %v3215_v11, %v1327_v12  ;;  %v1723_v21 = vld [vmem:[%s3658_s3 + $0x90] sm:$0xff] }
 0x1a4   : > { %1803 = vmatpush2.msra.mxu1 %v1723_v21 }
 0x1a5   : > { %1454 = vst.msk [vmem:[#allocation2 + $0x40] sm:$0xff] %vm1079_vm7, %v1328_v3  ;;  %1804 = vmatprep.subr.mxu1 %v2371_v53 }
 0x1a6   : > { %1805 = vmatpush2.msra.mxu1 %v1722_v38 }
 0x1a7   : > { %1806 = vmatprep.subr.mxu1 %v2371_v53 }
 0x1a8   : > { %1807 = vmatpush2.msra.mxu1 %v1721_v17 }
 0x1ac   : > { %v1481_v24 = vld [vmem:[#allocation2 + $0x28] ss:$5 sm:$0xff]  ;;  %v1495_v37 = vld [vmem:[#allocation2 + $0x29] ss:$5 sm:$0xff] }
 0x1ad   : > { %v1507_v40 = vmax.f32 %v1481_v24, %v1495_v37  ;;  %v1516_v30 = vld [vmem:[#allocation2 + $0x2a] ss:$5 sm:$0xff]  ;;  %v1537_v49 = vld [vmem:[#allocation2 + $0x2b] ss:$5 sm:$0xff]  ;;  %v1611_v37 = vrot.slane %v3275_v44, 2 }
 0x1ae   : > { %v1558_v15 = vld [vmem:[#allocation2 + $0x2c] ss:$5 sm:$0xff] }
 0x1af   : > { %v1528_v31 = vmax.f32 %v1507_v40, %v1516_v30  ;;  %v1582_v40 = vrot.slane %v3275_v44, 1 }
 0x1b0   : > { %v2193_v27 = vpop.f32.mrf.mxu0 }
 0x1b1   : > { %v1343_v51 = vadd.f32 %v2193_v27, %v3215_v11  ;;  %v1549_v43 = vmax.f32 %v1528_v31, %v1537_v49 }
 0x1b2   : > { %v1337_v46 = vpop.f32.mrf.mxu0 }
 0x1b3   : > { %1457 = vst.msk [vmem:[#allocation2 + $0x58] sm:$0xff] %vm1079_vm7, %v1343_v51  ;;  %v1338_v20 = vadd.f32 %v3215_v11, %v1337_v46  ;;  %v3279_v5 = vmax.f32 %v1549_v43, %v1558_v15  ;;  %v1641_v15 = vrot.slane %v3275_v44, 3 }
 0x1b5   : > { %1456 = vst.msk [vmem:[#allocation2 + $0x50] sm:$0xff] %vm1079_vm7, %v1338_v20  ;;  %v1673_v47 = vrot.slane %v3279_v5, 4  ;;  %v1612_v19 = vrot.slane %v3279_v5, 2  ;;  %v1583_v24 = vrot.slane %v3279_v5, 1  ;;  %v1642_v31 = vrot.slane %v3279_v5, 3 }
 0x1b7   : > { %v1674_v32 = vsel %vm820_vm3, %v1672_v56, %v1673_v47  ;;  %v1613_v27 = vsel %vm500_vm0, %v1611_v37, %v1612_v19  ;;  %v1584_v50 = vsel %vm340_vm1, %v1582_v40, %v1583_v24  ;;  %v1643_v56 = vsel %vm660_vm2, %v1641_v15, %v1642_v31 }
 0x1b8   : > { %2117 = vmatprep.mubr.msk.f32.mxu1 %vm1079_vm7, %v1674_v32 }
 0x1c0   : > { %v2196_v33 = vpop.f32.mrf.mxu0 }
 0x1c1   : > { %v1353_v48 = vadd.f32 %v2196_v33, %v3215_v11 }
 0x1c2   : > { %v1347_v45 = vpop.f32.mrf.mxu0 }
 0x1c3   : > { %1459 = vst.msk [vmem:[#allocation2 + $0x68] sm:$0xff] %vm1079_vm7, %v1353_v48  ;;  %v1348_v57 = vadd.f32 %v3215_v11, %v1347_v45 }
 0x1c5   : > { %1458 = vst.msk [vmem:[#allocation2 + $0x60] sm:$0xff] %vm1079_vm7, %v1348_v57 }
 0x1df   : > { %v2199_v42 = vpop.f32.mrf.mxu0  ;;  %v2208_v58 = vpop.f32.mrf.mxu1 }
 0x1e0   : > { %v1363_v1 = vadd.f32 %v2199_v42, %v3215_v11  ;;  %v1393_v2 = vadd.f32 %v2208_v58, %v3215_v11 }
 0x1e1   : > { %v1357_v7 = vpop.f32.mrf.mxu0  ;;  %v1387_v54 = vpop.f32.mrf.mxu1 }
 0x1e2   : > { %1461 = vst.msk [vmem:[#allocation2 + $0x78] sm:$0xff] %vm1079_vm7, %v1363_v1  ;;  %1467 = vst.msk [vmem:[#allocation2 + $0xa8] sm:$0xff] %vm1079_vm7, %v1393_v2  ;;  %v1358_v36 = vadd.f32 %v3215_v11, %v1357_v7  ;;  %v1388_v28 = vadd.f32 %v3215_v11, %v1387_v54 }
 0x1e4   : > { %1460 = vst.msk [vmem:[#allocation2 + $0x70] sm:$0xff] %vm1079_vm7, %v1358_v36  ;;  %1466 = vst.msk [vmem:[#allocation2 + $0xa0] sm:$0xff] %vm1079_vm7, %v1388_v28 }
 0x1eb   : > { %v1483_v34 = vld [vmem:[#allocation2 + $0x50] ss:$5 sm:$0xff]  ;;  %v1497_v8 = vld [vmem:[#allocation2 + $0x51] ss:$5 sm:$0xff] }
 0x1ec   : > { %v1508_v13 = vmax.f32 %v1483_v34, %v1497_v8  ;;  %v1518_v9 = vld [vmem:[#allocation2 + $0x52] ss:$5 sm:$0xff]  ;;  %v1539_v12 = vld [vmem:[#allocation2 + $0x53] ss:$5 sm:$0xff] }
 0x1ed   : > { %v1560_v3 = vld [vmem:[#allocation2 + $0x54] ss:$5 sm:$0xff] }
 0x1ee   : > { %v1529_v10 = vmax.f32 %v1508_v13, %v1518_v9 }
 0x1f0   : > { %v1550_v29 = vmax.f32 %v1529_v10, %v1539_v12 }
 0x1f2   : > { %v3380_v35 = vmax.f32 %v1550_v29, %v1560_v3 }
 0x1f4   : > { %v1614_v39 = vrot.slane %v3380_v35, 2  ;;  %v1585_v63 = vrot.slane %v3380_v35, 1  ;;  %v1644_v30 = vrot.slane %v3380_v35, 3 }
 0x1f6   : > { %v1615_v49 = vsel %vm500_vm0, %v1612_v19, %v1614_v39  ;;  %v1586_v51 = vsel %vm340_vm1, %v1583_v24, %v1585_v63  ;;  %v1645_v20 = vsel %vm660_vm2, %v1642_v31, %v1644_v30 }
 0x1f7   : > { %v2285_v43 = vpack.i.bf16 %v1615_v49, %v1613_v27  ;;  %v2280_v46 = vpack.i.bf16 %v1586_v51, %v1584_v50  ;;  %v2290_v32 = vpack.i.bf16 %v1645_v20, %v1643_v56 }
 0x1f9   : > { %2286 = vrot.lane.b32.xlu1 %v2285_v43, %s2372_s21  ;;  %2281 = vrot.lane.b32.xlu0 %v2280_v46, %s2370_s17 }
 0x1fd   : > { %2291 = vrot.lane.b32.xlu0 %v2290_v32, %s2373_s22 }
 0x1ff   : > { %v2202_v33 = vpop.f32.mrf.mxu0  ;;  %v2211_v48 = vpop.f32.mrf.mxu1 }
 0x200   : > { %v1373_v45 = vadd.f32 %v2202_v33, %v3215_v11  ;;  %v1403_v57 = vadd.f32 %v2211_v48, %v3215_v11 }
 0x201   : > { %v1367_v60 = vpop.f32.mrf.mxu0  ;;  %v1397_v26 = vpop.f32.mrf.mxu1 }
 0x202   : > { %1463 = vst.msk [vmem:[#allocation2 + $0x88] sm:$0xff] %vm1079_vm7, %v1373_v45  ;;  %1469 = vst.msk [vmem:[#allocation2 + $0xb8] sm:$0xff] %vm1079_vm7, %v1403_v57  ;;  %v1368_v61 = vadd.f32 %v3215_v11, %v1367_v60  ;;  %v1398_v22 = vadd.f32 %v3215_v11, %v1397_v26 }
 0x204   : > { %1462 = vst.msk [vmem:[#allocation2 + $0x80] sm:$0xff] %vm1079_vm7, %v1368_v61  ;;  %1468 = vst.msk [vmem:[#allocation2 + $0xb0] sm:$0xff] %vm1079_vm7, %v1398_v22 }
 0x21b   : > { %v2205_v62 = vpop.f32.mrf.mxu0 }
 0x21c   : > { %v1383_v0 = vadd.f32 %v2205_v62, %v3215_v11 }
 0x21d   : > { %v1377_v25 = vpop.f32.mrf.mxu0 }
 0x21e   : > { %1465 = vst.msk [vmem:[#allocation2 + $0x98] sm:$0xff] %vm1079_vm7, %v1383_v0  ;;  %v1378_v4 = vadd.f32 %v3215_v11, %v1377_v25 }
 0x21f   : > { %v2214_v52 = vpop.f32.mrf.mxu1 }
 0x220   : > { %1464 = vst.msk [vmem:[#allocation2 + $0x90] sm:$0xff] %vm1079_vm7, %v1378_v4  ;;  %v1413_v41 = vadd.f32 %v2214_v52, %v3215_v11 }
 0x221   : > { %v1407_v42 = vpop.f32.mrf.mxu1 }
 0x222   : > { %1471 = vst.msk [vmem:[#allocation2 + $0xc8] sm:$0xff] %vm1079_vm7, %v1413_v41  ;;  %v1408_v58 = vadd.f32 %v3215_v11, %v1407_v42 }
 0x224   : > { %1470 = vst.msk [vmem:[#allocation2 + $0xc0] sm:$0xff] %vm1079_vm7, %v1408_v58 }
 0x227   : > { %v1485_v6 = vld [vmem:[#allocation2 + $0x78] ss:$5 sm:$0xff]  ;;  %v1499_v1 = vld [vmem:[#allocation2 + $0x79] ss:$5 sm:$0xff] }
 0x228   : > { %v1509_v2 = vmax.f32 %v1485_v6, %v1499_v1  ;;  %v1520_v7 = vld [vmem:[#allocation2 + $0x7a] ss:$5 sm:$0xff]  ;;  %v1541_v28 = vld [vmem:[#allocation2 + $0x7b] ss:$5 sm:$0xff] }
 0x229   : > { %v1562_v14 = vld [vmem:[#allocation2 + $0x7c] ss:$5 sm:$0xff] }
 0x22a   : > { %v1530_v54 = vmax.f32 %v1509_v2, %v1520_v7 }
 0x22b   : > { %v1487_v59 = vld [vmem:[#allocation2 + $0xa0] ss:$5 sm:$0xff]  ;;  %v1501_v36 = vld [vmem:[#allocation2 + $0xa1] ss:$5 sm:$0xff] }
 0x22c   : > { %v1510_v55 = vmax.f32 %v1487_v59, %v1501_v36  ;;  %v1551_v23 = vmax.f32 %v1530_v54, %v1541_v28  ;;  %v1522_v18 = vld [vmem:[#allocation2 + $0xa2] ss:$5 sm:$0xff]  ;;  %v1543_v9 = vld [vmem:[#allocation2 + $0xa3] ss:$5 sm:$0xff] }
 0x22d   : > { %v1564_v12 = vld [vmem:[#allocation2 + $0xa4] ss:$5 sm:$0xff] }
 0x22e   : > { %v1531_v34 = vmax.f32 %v1510_v55, %v1522_v18  ;;  %v3423_v8 = vmax.f32 %v1551_v23, %v1562_v14 }
 0x22f   : > { %v2217_v13 = vpop.f32.mrf.mxu1 }
 0x230   : > { %v1423_v16 = vadd.f32 %v2217_v13, %v3215_v11  ;;  %v1552_v10 = vmax.f32 %v1531_v34, %v1543_v9  ;;  %v1616_v3 = vrot.slane %v3423_v8, 2  ;;  %v1587_v17 = vrot.slane %v3423_v8, 1 }
 0x231   : > { %v1417_v21 = vpop.f32.mrf.mxu1  ;;  %v1646_v51 = vrot.slane %v3423_v8, 3 }
 0x232   : > { %1473 = vst.msk [vmem:[#allocation2 + $0xd8] sm:$0xff] %vm1079_vm7, %v1423_v16  ;;  %v1418_v29 = vadd.f32 %v3215_v11, %v1417_v21  ;;  %v3428_v38 = vmax.f32 %v1552_v10, %v1564_v12  ;;  %v1617_v37 = vsel %vm500_vm0, %v1614_v39, %v1616_v3  ;;  %v1588_v31 = vsel %vm340_vm1, %v1585_v63, %v1587_v17 }
 0x233   : > { %v1647_v15 = vsel %vm660_vm2, %v1644_v30, %v1646_v51  ;;  %v1675_v12 = vrot.slane %v3380_v35, 4 }
 0x234   : > { %1472 = vst.msk [vmem:[#allocation2 + $0xd0] sm:$0xff] %vm1079_vm7, %v1418_v29  ;;  %v1618_v19 = vrot.slane %v3428_v38, 2  ;;  %v1589_v24 = vrot.slane %v3428_v38, 1  ;;  %v1648_v43 = vrot.slane %v3428_v38, 3 }
 0x236   : > { %v1619_v40 = vsel %vm500_vm0, %v1616_v3, %v1618_v19  ;;  %v1590_v27 = vsel %vm340_vm1, %v1587_v17, %v1589_v24  ;;  %v1649_v39 = vsel %vm660_vm2, %v1646_v51, %v1648_v43 }
 0x237   : > { %v2300_v49 = vpack.i.bf16 %v1619_v40, %v1617_v37  ;;  %v2295_v50 = vpack.i.bf16 %v1590_v27, %v1588_v31  ;;  %v1677_v40 = vrot.slane %v3423_v8, 4 }
 0x239   : > { %2301 = vrot.lane.b32.xlu0 %v2300_v49, %s2372_s21  ;;  %2296 = vrot.lane.b32.xlu1 %v2295_v50, %s2370_s17  ;;  %v1678_v49 = vsel %vm820_vm3, %v1675_v12, %v1677_v40 }
 0x23c   : > { %v2220_v46 = vpop.f32.mrf.mxu1 }
 0x23d   : > { %v1433_v63 = vadd.f32 %v2220_v46, %v3215_v11  ;;  %1660 = vrot.lane.b32.xlu0 %v1649_v39, %s2373_s22  ;;  %1658 = vrot.lane.b32.xlu1 %v1647_v15, %s2373_s22 }
 0x23e   : > { %v1427_v20 = vpop.f32.mrf.mxu1 }
 0x23f   : > { %1475 = vst.msk [vmem:[#allocation2 + $0xe8] sm:$0xff] %vm1079_vm7, %v1433_v63  ;;  %v1428_v56 = vadd.f32 %v3215_v11, %v1427_v20 }
 0x241   : > { %1474 = vst.msk [vmem:[#allocation2 + $0xe0] sm:$0xff] %vm1079_vm7, %v1428_v56 }
 0x248   : > { %v1489_v32 = vld [vmem:[#allocation2 + $0xc8] ss:$5 sm:$0xff]  ;;  %v1503_v33 = vld [vmem:[#allocation2 + $0xc9] ss:$5 sm:$0xff] }
 0x249   : > { %v1511_v48 = vmax.f32 %v1489_v32, %v1503_v33  ;;  %v1524_v45 = vld [vmem:[#allocation2 + $0xca] ss:$5 sm:$0xff]  ;;  %v1545_v30 = vld [vmem:[#allocation2 + $0xcb] ss:$5 sm:$0xff] }
 0x24a   : > { %v1566_v62 = vld [vmem:[#allocation2 + $0xcc] ss:$5 sm:$0xff] }
 0x24b   : > { %v1532_v57 = vmax.f32 %v1511_v48, %v1524_v45 }
 0x24c   : > { %v2223_v60 = vpop.f32.mrf.mxu1 }
 0x24d   : > { %v1443_v26 = vadd.f32 %v2223_v60, %v3215_v11  ;;  %v1553_v61 = vmax.f32 %v1532_v57, %v1545_v30 }
 0x24e   : > { %v1437_v22 = vpop.f32.mrf.mxu1 }
 0x24f   : > { %1478 = vst.msk [vmem:[#allocation2 + $0xf8] sm:$0xf] %vm1477_vm9, %v1443_v26  ;;  %v1438_v0 = vadd.f32 %v3215_v11, %v1437_v22  ;;  %v3459_v25 = vmax.f32 %v1553_v61, %v1566_v62 }
 0x251   : > { %1476 = vst.msk [vmem:[#allocation2 + $0xf0] sm:$0xff] %vm1079_vm7, %v1438_v0  ;;  %v1620_v4 = vrot.slane %v3459_v25, 2  ;;  %v1591_v52 = vrot.slane %v3459_v25, 1  ;;  %v1650_v58 = vrot.slane %v3459_v25, 3  ;;  %v1681_v57 = vrot.slane %v3459_v25, 4 }
 0x253   : > { %v1621_v41 = vsel %vm500_vm0, %v1618_v19, %v1620_v4  ;;  %v1592_v42 = vsel %vm340_vm1, %v1589_v24, %v1591_v52  ;;  %v1651_v11 = vsel %vm660_vm2, %v1648_v43, %v1650_v58 }
 0x254   : > { %1630 = vrot.lane.b32.xlu0 %v1621_v41, %s2372_s21  ;;  %1601 = vrot.lane.b32.xlu1 %v1592_v42, %s2370_s17 }
 0x258   : > { %1603 = vrot.lane.b32.xlu0 %v1591_v52, %s2370_s17  ;;  %1662 = vrot.lane.b32.xlu1 %v1651_v11, %s2373_s22  ;;  %v1491_v6 = vld [vmem:[#allocation2 + $0xf0] ss:$5 sm:$0x3]  ;;  %v1505_v1 = vld [vmem:[#allocation2 + $0xf1] ss:$5 sm:$0x3] }
 0x259   : > { %v1512_v2 = vmax.f32 %v1491_v6, %v1505_v1  ;;  %v1526_v7 = vld [vmem:[#allocation2 + $0xf2] ss:$5 sm:$0x3]  ;;  %v1547_v54 = vld [vmem:[#allocation2 + $0xf3] ss:$5 sm:$0x3] }
 0x25a   : > { %v1568_v36 = vld [vmem:[#allocation2 + $0xf4] ss:$5 sm:$0x3] }
 0x25b   : > { %v1533_v59 = vmax.f32 %v1512_v2, %v1526_v7  ;;  %v1908_v6 = vld [vmem:[%s3660_s5 + $0x78] sm:$0xff]  ;;  %v1907_v1 = vld [vmem:[%s3660_s5 + $0x70] sm:$0xff]  ;;  %v3528_v2 = vld [vmem:[%s3659_s4] ss:$0 sm:$0xff] }
 0x25c   : > { %1632 = vrot.lane.b32.xlu1 %v1620_v4, %s2372_s21  ;;  %1923 = vmatpush1.msra.mxu0 %v1908_v6  ;;  %v1905_v7 = vld [vmem:[%s3660_s5 + $0x60] sm:$0xff] }
 0x25d   : > { %v1554_v28 = vmax.f32 %v1533_v59, %v1547_v54  ;;  %1924 = vmatprep.subr.mxu0 %v2371_v53 }
 0x25e   : > { %1925 = vmatpush1.msra.mxu0 %v1907_v1 }
 0x25f   : > { %v1575_v55 = vmax.f32 %v1554_v28, %v1568_v36  ;;  %1926 = vmatprep.subr.mxu0 %v2371_v53  ;;  %v1904_v36 = vld [vmem:[%s3660_s5 + $0x58] sm:$0xff] }
 0x261   : > { %v1652_v23 = vrot.slane %v1575_v55, 3  ;;  %v1683_v61 = vrot.slane %v1575_v55, 4  ;;  %v1903_v55 = vld [vmem:[%s3660_s5 + $0x50] sm:$0xff] }
 0x263   : > { %v1653_v18 = vsel %vm660_vm2, %v1650_v58, %v1652_v23  ;;  %v1684_v4 = vsel %vm820_vm3, %v1681_v57, %v1683_v61 }
 0x264   : > { %1664 = vrot.lane.b32.xlu0 %v1653_v18, %s2373_s22 }
 0x26b   : > { %v2287_v14 = vpop.permute.xlu1 %2286  ;;  %v2282_v34 = vpop.permute.xlu0 %2281 }
 0x26c   : > { %v2283_v13 = vunpack.i.l.bf16 %v2282_v34  ;;  %v2288_v9 = vunpack.i.l.bf16 %v2287_v14  ;;  %v2284_v16 = vunpack.i.h.bf16 %v2282_v34  ;;  %v2289_v3 = vunpack.i.h.bf16 %v2287_v14  ;;  %v1902_v14 = vld [vmem:[%s3660_s5 + $0x48] sm:$0xff] }
 0x26e   : > { %v1685_v10 = vsel %vm1079_vm7, %v3275_v44, %v2283_v13  ;;  %v1686_v37 = vsel %vm1079_vm7, %v3279_v5, %v2284_v16  ;;  %v1676_v44 = vsel %vm820_vm3, %v1673_v47, %v1675_v12  ;;  %v1679_v47 = vrot.slane %v3428_v38, 4  ;;  %v1901_v13 = vld [vmem:[%s3660_s5 + $0x40] sm:$0xff]  ;;  %v1899_v16 = vld [vmem:[%s3660_s5 + $0x30] sm:$0xff]  ;;  %v1896_v12 = vld [vmem:[%s3660_s5 + $0x18] sm:$0xff] }
 0x26f   : > { %v2292_v21 = vpop.permute.xlu0 %2291  ;;  %v1692_v17 = vsel %vm1691_vm10, %v1685_v10, %v2288_v9  ;;  %v1693_v31 = vsel %vm1691_vm10, %v1686_v37, %v2289_v3  ;;  %v1900_v9 = vld [vmem:[%s3660_s5 + $0x38] sm:$0xff]  ;;  %v1898_v10 = vld [vmem:[%s3660_s5 + $0x28] sm:$0xff] }
 0x270   : > { %v2293_v29 = vunpack.i.l.bf16 %v2292_v21  ;;  %v2294_v19 = vunpack.i.h.bf16 %v2292_v21  ;;  %v1680_v48 = vsel %vm820_vm3, %v1677_v40, %v1679_v47  ;;  %v1897_v21 = vld [vmem:[%s3660_s5 + $0x20] sm:$0xff]  ;;  %v1894_v3 = vld [vmem:[%s3660_s5 + $0x8] sm:$0xff] }
 0x272   : > { %v1699_v24 = vsel %vm1698_vm11, %v1692_v17, %v2293_v29  ;;  %v1700_v27 = vsel %vm1698_vm11, %v1693_v31, %v2294_v19  ;;  %v1895_v29 = vld [vmem:[%s3660_s5 + $0x10] sm:$0xff]  ;;  %v1893_v17 = vld [vmem:[%s3660_s5] sm:$0xff]  ;;  %v1912_v19 = vld [vmem:[%s3660_s5 + $0x98] sm:$0xff] }
 0x273   : > { %1809 = vmatmul.mubr.f32.vlgmr.msra.gmra.mxu1 %v1699_v24  ;;  %v1911_v24 = vld [vmem:[%s3660_s5 + $0x90] sm:$0xff] }
 0x274   : > { %2118 = vmatprep.mubr.msk.f32.mxu1 %vm1079_vm7, %v1676_v44 }
 0x277   : > { %1814 = vmatmul.mubr.f32.gmra.mxu1 %v1700_v27 }
 0x278   : > { %2119 = vmatprep.mubr.msk.f32.mxu1 %vm1079_vm7, %v1678_v49 }
 0x2ab   : > { %v2297_v50 = vpop.permute.xlu1 %2296  ;;  %v2302_v51 = vpop.permute.xlu0 %2301 }
 0x2ac   : > { %v2299_v43 = vunpack.i.h.bf16 %v2297_v50  ;;  %v2298_v46 = vunpack.i.l.bf16 %v2297_v50  ;;  %v2303_v5 = vunpack.i.l.bf16 %v2302_v51  ;;  %v2304_v39 = vunpack.i.h.bf16 %v2302_v51 }
 0x2ae   : > { %v1687_v15 = vsel %vm1079_vm7, %v3380_v35, %v2298_v46  ;;  %v1688_v63 = vsel %vm1079_vm7, %v3423_v8, %v2299_v43  ;;  %v1682_v8 = vsel %vm820_vm3, %v1679_v47, %v1681_v57  ;;  %v1910_v46 = vld [vmem:[%s3660_s5 + $0x88] sm:$0xff] }
 0x2af   : > { %v1659_v20 = vpop.permute.xlu1 %1658  ;;  %v1694_v56 = vsel %vm1691_vm10, %v1687_v15, %v2303_v5  ;;  %v1661_v33 = vpop.permute.xlu0 %1660  ;;  %v1695_v45 = vsel %vm1691_vm10, %v1688_v63, %v2304_v39  ;;  %v1909_v5 = vld [vmem:[%s3660_s5 + $0x80] sm:$0xff] }
 0x2b0   : > { %v1701_v32 = vsel %vm1698_vm11, %v1694_v56, %v1659_v20  ;;  %v1702_v35 = vsel %vm1698_vm11, %v1695_v45, %v1661_v33 }
 0x2b1   : > { %1819 = vmatmul.mubr.f32.gmra.mxu1 %v1701_v32 }
 0x2b2   : > { %2120 = vmatprep.mubr.msk.f32.mxu1 %vm1079_vm7, %v1680_v48 }
 0x2b5   : > { %1824 = vmatmul.mubr.f32.gmra.mxu1 %v1702_v35 }
 0x2b6   : > { %2121 = vmatprep.mubr.msk.f32.mxu1 %vm1079_vm7, %v1682_v8 }
 0x2c6   : > { %v1602_v60 = vpop.permute.xlu1 %1601  ;;  %v1631_v26 = vpop.permute.xlu0 %1630 }
 0x2c7   : > { %v1689_v30 = vsel %vm1079_vm7, %v3428_v38, %v1602_v60 }
 0x2c8   : > { %v1696_v22 = vsel %vm1691_vm10, %v1689_v30, %v1631_v26 }
 0x2ca   : > { %v1663_v62 = vpop.permute.xlu1 %1662  ;;  %v1604_v52 = vpop.permute.xlu0 %1603 }
 0x2cb   : > { %v1703_v0 = vsel %vm1698_vm11, %v1696_v22, %v1663_v62  ;;  %v1690_v42 = vsel %vm1079_vm7, %v3459_v25, %v1604_v52  ;;  %v1906_v25 = vld [vmem:[%s3660_s5 + $0x68] sm:$0xff] }
 0x2cc   : > { %1829 = vmatmul.mubr.f32.gmra.mxu1 %v1703_v0  ;;  %1927 = vmatpush1.msra.mxu0 %v1906_v25 }
 0x2cd   : > { %2122 = vmatprep.mubr.msk.f32.mxu1 %vm1079_vm7, %v1684_v4  ;;  %1928 = vmatprep.subr.mxu0 %v2371_v53 }
 0x2ce   : > { %v1633_v41 = vpop.permute.xlu1 %1632  ;;  %1929 = vmatpush1.msra.mxu0 %v1905_v7 }
 0x2cf   : > { %v1697_v58 = vsel %vm1691_vm10, %v1690_v42, %v1633_v41  ;;  %1930 = vmatprep.subr.mxu0 %v2371_v53 }
 0x2d0   : > { %1931 = vmatpush1.msra.mxu0 %v1904_v36 }
 0x2d1   : > { %1932 = vmatprep.subr.mxu0 %v2371_v53 }
 0x2d2   : > { %1933 = vmatpush1.msra.mxu0 %v1903_v55 }
 0x2d3   : > { %1934 = vmatprep.subr.mxu0 %v2371_v53 }
 0x2d4   : > { %1935 = vmatpush1.msra.mxu0 %v1902_v14 }
 0x2d5   : > { %1936 = vmatprep.subr.mxu0 %v2371_v53 }
 0x2d6   : > { %v1665_v38 = vpop.permute.xlu0 %1664  ;;  %1937 = vmatpush1.msra.mxu0 %v1901_v13 }
 0x2d7   : > { %v1704_v11 = vsel %vm1698_vm11, %v1697_v58, %v1665_v38  ;;  %1938 = vmatprep.subr.mxu0 %v2371_v53 }
 0x2d8   : > { %1834 = vmatmul.mubr.f32.gmra.mxu1 %v1704_v11  ;;  %1939 = vmatpush1.msra.mxu0 %v1900_v9 }
 0x2d9   : > { %1940 = vmatprep.subr.mxu0 %v2371_v53 }
 0x2da   : > { %1941 = vmatpush1.msra.mxu0 %v1899_v16 }
 0x2db   : > { %1942 = vmatprep.subr.mxu0 %v2371_v53 }
 0x2dc   : > { %1943 = vmatpush1.msra.mxu0 %v1898_v10 }
 0x2dd   : > { %1944 = vmatprep.subr.mxu0 %v2371_v53 }
 0x2de   : > { %1945 = vmatpush1.msra.mxu0 %v1897_v21 }
 0x2df   : > { %1946 = vmatprep.subr.mxu0 %v2371_v53 }
 0x2e0   : > { %1947 = vmatpush1.msra.mxu0 %v1896_v12 }
 0x2e1   : > { %1948 = vmatprep.subr.mxu0 %v2371_v53 }
 0x2e2   : > { %1949 = vmatpush1.msra.mxu0 %v1895_v29 }
 0x2e3   : > { %1950 = vmatprep.subr.mxu0 %v2371_v53 }
 0x2e4   : > { %1951 = vmatpush1.msra.mxu0 %v1894_v3 }
 0x2e5   : > { %1952 = vmatprep.subr.mxu0 %v2371_v53 }
 0x2e6   : > { %1953 = vmatpush1.msra.mxu0 %v1893_v17 }
 0x2e7   : > { %1978 = vmatprep.subr.mxu0 %v2371_v53 }
 0x2e8   : > { %1979 = vmatpush2.msra.mxu0 %v1912_v19 }
 0x2e9   : > { %1980 = vmatprep.subr.mxu0 %v2371_v53 }
 0x2ea   : > { %1981 = vmatpush2.msra.mxu0 %v1911_v24 }
 0x2eb   : > { %1982 = vmatprep.subr.mxu0 %v2371_v53 }
 0x2ec   : > { %1983 = vmatpush2.msra.mxu0 %v1910_v46 }
 0x2ed   : > { %1984 = vmatprep.subr.mxu0 %v2371_v53 }
 0x2ee   : > { %1985 = vmatpush2.msra.mxu0 %v1909_v5 }
 0x333   : > { %v1810_v54 = vpop.f32.mrf.mxu1 }
 0x334   : > { %v1811_v59 = vadd.f32 %v3528_v2, %v1810_v54  ;;  %v2123_v54 = vld [vmem:[%s3661_s6] ss:$0 sm:$0xff] }
 0x335   : > { %v1812_v28 = vpop.f32.mrf.mxu1 }
 0x336   : > { %1839 = vst.msk [vmem:[#allocation3] sm:$0xff] %vm1079_vm7, %v1811_v59 }
 0x337   : > { %v1815_v23 = vpop.f32.mrf.mxu1 }
 0x338   : > { %v1816_v18 = vadd.f32 %v3528_v2, %v1815_v23 }
 0x339   : > { %v1817_v34 = vpop.f32.mrf.mxu1 }
 0x33a   : > { %1840 = vst.msk [vmem:[#allocation3 + $0x8] sm:$0xff] %vm1079_vm7, %v1816_v18 }
 0x371   : > { %v1820_v37 = vpop.f32.mrf.mxu1 }
 0x372   : > { %v1821_v44 = vadd.f32 %v3528_v2, %v1820_v37 }
 0x373   : > { %v1822_v40 = vpop.f32.mrf.mxu1 }
 0x374   : > { %1841 = vst.msk [vmem:[#allocation3 + $0x10] sm:$0xff] %vm1079_vm7, %v1821_v44 }
 0x375   : > { %v1825_v31 = vpop.f32.mrf.mxu1 }
 0x376   : > { %v1826_v27 = vadd.f32 %v3528_v2, %v1825_v31 }
 0x377   : > { %v1827_v49 = vpop.f32.mrf.mxu1 }
 0x378   : > { %1842 = vst.msk [vmem:[#allocation3 + $0x18] sm:$0xff] %vm1079_vm7, %v1826_v27 }
 0x38c   : > { %v1830_v50 = vpop.f32.mrf.mxu1 }
 0x38d   : > { %v1831_v51 = vadd.f32 %v3528_v2, %v1830_v50 }
 0x38e   : > { %v1832_v43 = vpop.f32.mrf.mxu1 }
 0x38f   : > { %1843 = vst.msk [vmem:[#allocation3 + $0x20] sm:$0xff] %vm1079_vm7, %v1831_v51 }
 0x396   : > { %v1846_v39 = vld [vmem:[#allocation3] ss:$5 sm:$0xff]  ;;  %v1850_v47 = vld [vmem:[#allocation3 + $0x1] ss:$5 sm:$0xff] }
 0x397   : > { %v1853_v15 = vmax.f32 %v1846_v39, %v1850_v47  ;;  %v1856_v20 = vld [vmem:[#allocation3 + $0x2] ss:$5 sm:$0xff]  ;;  %v1862_v48 = vld [vmem:[#allocation3 + $0x3] ss:$5 sm:$0xff] }
 0x398   : > { %v1835_v63 = vpop.f32.mrf.mxu1  ;;  %v1868_v57 = vld [vmem:[#allocation3 + $0x4] ss:$5 sm:$0xff] }
 0x399   : > { %v1836_v56 = vadd.f32 %v3528_v2, %v1835_v63  ;;  %v1859_v32 = vmax.f32 %v1853_v15, %v1856_v20 }
 0x39a   : > { %v1837_v33 = vpop.f32.mrf.mxu1 }
 0x39b   : > { %1845 = vst.msk [vmem:[#allocation3 + $0x28] sm:$0x3f] %vm1844_vm12, %v1836_v56  ;;  %v1865_v45 = vmax.f32 %v1859_v32, %v1862_v48 }
 0x39d   : > { %v1871_v35 = vmax.f32 %v1865_v45, %v1868_v57 }
 0x39f   : > { %v1878_v8 = vrot.slane %v1871_v35, 2  ;;  %v1874_v60 = vrot.slane %v1871_v35, 1  ;;  %v1882_v26 = vrot.slane %v1871_v35, 3  ;;  %v1887_v42 = vrot.slane %v1871_v35, 4 }
 0x3a1   : > { %1879 = vrot.lane.b32.xlu0 %v1878_v8, %s2372_s21  ;;  %1875 = vrot.lane.b32.xlu1 %v1874_v60, %s2370_s17 }
 0x3a2   : > { %v1848_v53 = vld [vmem:[#allocation3 + $0x28] ss:$5 sm:$0x1]  ;;  %v1852_v30 = vld [vmem:[#allocation3 + $0x29] ss:$5 sm:$0x1] }
 0x3a3   : > { %v1854_v61 = vmax.f32 %v1848_v53, %v1852_v30  ;;  %v1858_v22 = vld [vmem:[#allocation3 + $0x2a] ss:$5 sm:$0x1]  ;;  %v1864_v0 = vld [vmem:[#allocation3 + $0x2b] ss:$5 sm:$0x1] }
 0x3a4   : > { %v1870_v52 = vld [vmem:[#allocation3 + $0x2c] ss:$5 sm:$0x1] }
 0x3a5   : > { %1883 = vrot.lane.b32.xlu1 %v1882_v26, %s2373_s22  ;;  %v1860_v62 = vmax.f32 %v1854_v61, %v1858_v22  ;;  %s269_s22 = sand.u32 1, %s2357_s25  }
 0x3a6   : > { %s270_s20 = scalar_lea.vmem [#allocation5], %s269_s22  ;;  %s2010_s13 = scalar_lea.sflag [#allocation6], %s269_s22 }
 0x3a7   : > { %v1866_v4 = vmax.f32 %v1860_v62, %v1864_v0  ;;  %s2022_s23 = sshll.u32 %s270_s20, 4  ;;  %s2023_s23 = int_to_ptr.vmem [resolvable:$true] %s2022_s23 }
 0x3a8   : > { %s2305_s14 = scalar_lea.vmem %s2023_s23, 16  ;;  %p2312_p0 = scmp.lt.s32.totalorder %s2023_s23, %s2310_s28 }
 0x3a9   : > { %v1872_v41 = vmax.f32 %v1866_v4, %v1870_v52  ;;  %p2306_p11 = scmp.ne.s32.totalorder %s2023_s23, %s2305_s14  ;;  %p2313_p1 = scmp.lt.s32.totalorder %s2311_s16, %s2305_s14 }
 0x3ab   : > { %v1888_v58 = vrot.slane %v1872_v41, 4  ;;  %p2307_p12 = pnand %p2306_p11, %p2453_p5  ;;  %p2314_p2 = por %p2313_p1, %p2312_p0 }
 0x3ad   : > { %v1889_v38 = vsel %vm820_vm3, %v1887_v42, %v1888_v58  ;;  %p2308_p13 = pneg %p2307_p12 }
 0x3ae   : > { %2124 = vmatprep.mubr.msk.f32.mxu0 %vm1079_vm7, %v1889_v38 }
 0x3af   : > { %p2315_p3 = pnand %p2314_p2, %p2308_p13 }
 0x413   : > { %v1876_v11 = vpop.permute.xlu1 %1875  ;;  %v1880_v6 = vpop.permute.xlu0 %1879 }
 0x414   : > { %v1890_v1 = vsel %vm1079_vm7, %v1871_v35, %v1876_v11 }
 0x415   : > { %v1891_v25 = vsel %vm1691_vm10, %v1890_v1, %v1880_v6 }
 0x417   : > { %v1884_v2 = vpop.permute.xlu1 %1883 }
 0x418   : > { %v1892_v7 = vsel %vm1698_vm11, %v1891_v25, %v1884_v2 }
 0x419   : > { %1987 = vmatmul.mubr.f32.vlgmr.msra.gmra.mxu0 %v1892_v7 }
 0x4d9   : > { %v1988_v59 = vpop.f32.mrf.mxu0 }
 0x4da   : > { %v1989_v36 = vadd.f32 %v2123_v54, %v1988_v59 }
 0x4db   : > { %v1990_v28 = vpop.f32.mrf.mxu0 }
 0x4dc   : > { %1993 = vst.msk [vmem:[#allocation4] sm:$0x1f] %vm1992_vm13, %v1989_v36 }
 0x4e3   : > { %v1994_v55 = vld [vmem:[#allocation4] ss:$5 sm:$0x1]  ;;  %v1996_v23 = vld [vmem:[#allocation4 + $0x1] ss:$5 sm:$0x1] }
 0x4e4   : > { %v1997_v18 = vmax.f32 %v1994_v55, %v1996_v23  ;;  %v1999_v14 = vld [vmem:[#allocation4 + $0x2] ss:$5 sm:$0x1]  ;;  %v2002_v13 = vld [vmem:[#allocation4 + $0x3] ss:$5 sm:$0x1] }
 0x4e5   : > { %v2005_v16 = vld [vmem:[#allocation4 + $0x4] ss:$5 sm:$0x1] }
 0x4e6   : > { %v2000_v34 = vmax.f32 %v1997_v18, %v1999_v14 }
 0x4e8   : > { %v2003_v9 = vmax.f32 %v2000_v34, %v2002_v13 }
 0x4ea   : > { %v2006_v10 = vmax.f32 %v2003_v9, %v2005_v16 }
 0x4ec   : > { %2008 = vst.msk [vmem:[%s270_s20] sm:$0x1] %vm2007_vm14, %v2006_v10 }
 0x4ed   : > { %2318 = shalt.err (!%p2315_p3)
}
 0x4ee   : > { %s2319_s18 = scalar_lea.hbm %s2020_s9, 16  ;;  %s2323_s22 = scalar_lea.hbm %s3662_s7, 32 }
 0x4ef   : > { %p2320_p4 = scmp.ne.s32.totalorder %s2020_s9, %s2319_s18  ;;  %p2324_p9 = scmp.lt.s32.totalorder %s2020_s9, %s3662_s7 }
 0x4f0   : > { %p2325_p10 = scmp.lt.s32.totalorder %s2323_s22, %s2319_s18 }
 0x4f1   : > { %p2321_p7 = pnand %p2320_p4, %p2453_p5 }
 0x4f2   : > { %p2326_p11 = por %p2325_p10, %p2324_p9 }
 0x4f3   : > { %p2322_p8 = pneg %p2321_p7 }
 0x4f5   : > { %p2327_p12 = pnand %p2326_p11, %p2322_p8 }
 0x4f7   : > { %2330 = shalt.err (!%p2327_p12)
}
 0x4f8   : > { %2234 = dma.vmem_to_hbm [thread:$0]  (%p2453_p5), %s2023_s23, 16, %s2020_s9, %s2010_s13  }
 0x4f9 PF: > { %p2240_p13 = scmp.ge.s32.totalorder %s2365_s27, 2  ;;  %s2034_s29 = sand.u32 1, %s2353_s24  }
 0x4fa   : > { %s2035_s8 = scalar_lea.sflag [#allocation6], %s2034_s29 }
 0x4fb   : > { %p2237_p0 = pnand %p2240_p13, %p2457_p6 }
 0x4fd   : > { %p2238_p1 = pneg %p2237_p0 }
 0x4ff   : > { %2348 = dma.done.wait (%p2238_p1), %s2035_s8, 16  }
 0x500   : > { %2350 = vsyncadd (%p2238_p1), %s2035_s8, 4294967280  ;;  %p17_p2 = scmp.ge.s32.totalorder %s2440_s30, 4   ;;  %s3665_s24 = smov %s2357_s25 }
 0x501   : > { %s3666_s25 = smov %s2361_s26  ;;  %s3667_s26 = smov %s2451_s10 }
 0x502   : > { %s3668_s27 = smov %s2440_s30  ;;  %19 = sbr.rel (!%p17_p2) target bundleno = 3 (0x3), region = 130 }
 0x507   :  { %2039 = vsyncpa [#allocation6], 1 }
 0x508   :  { %2041 = vsyncpa [#allocation6 + $0x1], 1 }

</bundles_post_ra>
